<compile_context>
chip_gen: v7x
topology: tpu7x:2x2x1
jax: 0.10.0
libtpu: 0.0.40
codegen_flags: <defaults>
</compile_context>

<pallas_src>
import jax
import jax.numpy as jnp
from jax.experimental import pallas as pl
from jax.experimental.pallas import tpu as pltpu  # noqa: F401  (no scratch needed anymore)


# ------------------------------ fused kernel ---------------------------------
def _make_fused_kernel(T, B, H, num_layers, rows_per_layer):
    f32 = jnp.float32
    RPL = rows_per_layer  # per-layer row pitch in the packed weight slab

    def kernel(x_ref, w_ref, ln_ref, fc_ref, out_ref):
        L = num_layers
        h = [jnp.zeros((B, H), f32) for _ in range(L)]
        c = [jnp.zeros((B, H), f32) for _ in range(L)]

        # Layer wavefront: superstep s runs layer l at timestep t = s - l.
        # Layer l consumes h[l-1] from the previous superstep, so all active
        # layer updates inside one superstep are independent and overlap.
        for s in range(T + L - 1):
            new_h = list(h)
            new_c = list(c)
            for l in range(L):
                t = s - l
                if t < 0 or t >= T:
                    continue
                # Input to layer l at time t (known since previous superstep).
                inp = x_ref[t * B:(t + 1) * B, :] if l == 0 else h[l - 1]
                base = l * RPL
                # gates = inp @ W_ih^T + h @ W_hh^T + (b_ih + b_hh)
                # Two independent MXU pushes; only the h-matmul is on the
                # recurrent critical chain.
                gates = (
                    jnp.dot(inp, w_ref[base:base + H, :],
                            preferred_element_type=f32)
                    + jnp.dot(h[l], w_ref[base + H:base + 2 * H, :],
                              preferred_element_type=f32)
                    + w_ref[base + 2 * H:base + 2 * H + 1, :])        # (B, 4H)
                # Two transcendental pushes on the whole (8,128) gates vreg,
                # then slice i/f/g/o (PyTorch gate order) from the results.
                sg = jax.nn.sigmoid(gates)
                tg = jnp.tanh(gates)
                i_g = sg[:, 0 * H:1 * H]
                f_g = sg[:, 1 * H:2 * H]
                o_g = sg[:, 3 * H:4 * H]
                g_g = tg[:, 2 * H:3 * H]
                c_new = f_g * c[l] + i_g * g_g
                new_c[l] = c_new
                new_h[l] = o_g * jnp.tanh(c_new)
            h, c = new_h, new_c
        # TODO(synk): nn.LSTM inter-layer dropout (p=0.1) is train-mode only;
        # omitted here (inference semantics).

        # LayerNorm (eps=1e-5, biased variance) on the last hidden state.
        h_last = h[L - 1]                                            # (B, H)
        mean = jnp.mean(h_last, axis=-1, keepdims=True)
        var = jnp.mean((h_last - mean) ** 2, axis=-1, keepdims=True)
        hn = (h_last - mean) * jax.lax.rsqrt(var + 1e-5)
        hn = hn * ln_ref[0:1, :] + ln_ref[1:2, :]
        # FC head: weight in rows [0,H), bias in row H of the fc slab.
        out_ref[...] = (jnp.dot(hn, fc_ref[0:H, :],
                                preferred_element_type=f32)
                        + fc_ref[H:H + 1, :]).astype(out_ref.dtype)

    return kernel


# --------------------------------- forward -----------------------------------
def stock_predictor_forward(x, params):
    # x: (B, T, input_size), batch_first like PyTorch.
    B, T, F = x.shape
    H = params["lstm"][0][1].shape[1]          # w_hh: (4H, H)
    O = params["fc_w"].shape[0]
    L = len(params["lstm"])
    assert F <= H, "feature dim is zero-padded up to hidden size"

    # Pad batch to a sublane multiple (free in compute, keeps every per-step
    # slice tile-aligned); pad features to H so layer 0 shares the layer slab
    # layout (zero feature columns x zero weight rows -> no effect).
    Bp = ((B + 7) // 8) * 8
    x_tm = jnp.swapaxes(x, 0, 1).astype(jnp.float32)        # (T, B, F) time-major
    x_tm = jnp.pad(x_tm, ((0, 0), (0, Bp - B), (0, H - F)))
    x_flat = x_tm.reshape(T * Bp, H)

    # Pack all LSTM parameters into ONE slab (one DMA).  Per layer, a block of
    # RPL = 2H + 8 rows (sublane-aligned pitch):
    #   rows [0, H)      : W_ih^T  (input dim zero-padded to H for layer 0)
    #   rows [H, 2H)     : W_hh^T
    #   row  2H          : b_ih + b_hh
    #   rows 2H+1..2H+7  : zero padding
    RPL = 2 * H + 8
    slab = jnp.zeros((L * RPL, 4 * H), jnp.float32)
    for l, (w_ih, w_hh, b) in enumerate(params["lstm"]):
        w_ih_t = w_ih.T                                      # (Din, 4H)
        w_ih_t = jnp.pad(w_ih_t, ((0, H - w_ih_t.shape[0]), (0, 0)))
        slab = slab.at[l * RPL:l * RPL + H, :].set(w_ih_t)
        slab = slab.at[l * RPL + H:l * RPL + 2 * H, :].set(w_hh.T)
        slab = slab.at[l * RPL + 2 * H, :].set(b)

    ln_slab = jnp.stack([params["ln_gamma"], params["ln_beta"]], axis=0)   # (2, H)
    fc_slab = jnp.concatenate([params["fc_w"].T.astype(jnp.float32),
                               params["fc_b"].reshape(1, O)], axis=0)      # (H+1, O)

    out = pl.pallas_call(
        _make_fused_kernel(T, Bp, H, L, RPL),
        out_shape=jax.ShapeDtypeStruct((Bp, O), jnp.float32),
    )(x_flat, slab, ln_slab, fc_slab)
    return out[:B]


# ---------------------------- pure-JAX reference -----------------------------
def ref_forward(x, params):
    B = x.shape[0]
    h_seq = x
    for (w_ih, w_hh, b) in params["lstm"]:
        H = w_hh.shape[1]

        def step(carry, x_t, w_ih=w_ih, w_hh=w_hh, b=b):
            h, c = carry
            gates = x_t @ w_ih.T + h @ w_hh.T + b
            i, f, g, o = jnp.split(gates, 4, axis=-1)
            c = jax.nn.sigmoid(f) * c + jax.nn.sigmoid(i) * jnp.tanh(g)
            h = jax.nn.sigmoid(o) * jnp.tanh(c)
            return (h, c), h

        init = (jnp.zeros((B, H), jnp.float32), jnp.zeros((B, H), jnp.float32))
        _, hs = jax.lax.scan(step, init, jnp.swapaxes(h_seq, 0, 1))
        h_seq = jnp.swapaxes(hs, 0, 1)
    last = h_seq[:, -1, :]
    mean = last.mean(-1, keepdims=True)
    var = ((last - mean) ** 2).mean(-1, keepdims=True)
    ln = (last - mean) / jnp.sqrt(var + 1e-5) * params["ln_gamma"] + params["ln_beta"]
    return ln @ params["fc_w"].T + params["fc_b"]


# ------------------------------- params init ---------------------------------
def init_params(key, input_size, hidden_size, output_size, num_layers):
    k = 1.0 / jnp.sqrt(jnp.float32(hidden_size))
    layers = []
    for l in range(num_layers):
        d_in = input_size if l == 0 else hidden_size
        key, k1, k2, k3, k4 = jax.random.split(key, 5)
        w_ih = jax.random.uniform(k1, (4 * hidden_size, d_in), jnp.float32, -k, k)
        w_hh = jax.random.uniform(k2, (4 * hidden_size, hidden_size), jnp.float32, -k, k)
        b_ih = jax.random.uniform(k3, (4 * hidden_size,), jnp.float32, -k, k)
        b_hh = jax.random.uniform(k4, (4 * hidden_size,), jnp.float32, -k, k)
        layers.append((w_ih, w_hh, b_ih + b_hh))
    key, kf = jax.random.split(key)
    bound = jnp.sqrt(6.0 / (hidden_size + output_size))      # xavier_uniform_
    fc_w = jax.random.uniform(kf, (output_size, hidden_size), jnp.float32, -bound, bound)
    fc_b = jnp.zeros((output_size,), jnp.float32)             # constant_(0)
    return {
        "lstm": layers,
        "ln_gamma": jnp.ones((hidden_size,), jnp.float32),
        "ln_beta": jnp.zeros((hidden_size,), jnp.float32),
        "fc_w": fc_w,
        "fc_b": fc_b,
    }


if __name__ == "__main__":
    B, T, INPUT_SIZE = 2, 8, 4
    HIDDEN, OUTPUT, NUM_LAYERS = 32, 1, 3

    key = jax.random.PRNGKey(0)
    key, kx = jax.random.split(key)
    x = jax.random.normal(kx, (B, T, INPUT_SIZE), jnp.float32)
    params = init_params(key, INPUT_SIZE, HIDDEN, OUTPUT, NUM_LAYERS)

    out = jax.block_until_ready(stock_predictor_forward(x, params))
    ref = jax.block_until_ready(ref_forward(x, params))

    assert out.shape == (B, OUTPUT), out.shape
    assert jnp.allclose(out, ref, rtol=1e-4, atol=1e-4), (out, ref)
    print("KERNEL_OK")
</pallas_src>

<mosaic_0001>
module attributes {stable_mosaic.version = 11 : i64} {
  func.func @kernel(%arg0: memref<64x32xf32, #tpu.memory_space<vmem>>, %arg1: memref<216x128xf32, #tpu.memory_space<vmem>>, %arg2: memref<2x32xf32, #tpu.memory_space<vmem>>, %arg3: memref<33x1xf32, #tpu.memory_space<vmem>>, %arg4: memref<8x1xf32, #tpu.memory_space<vmem>>) attributes {dimension_semantics = [], scalar_prefetch = 0 : i64, scratch_operands = 0 : i64, tpu.core_type = #tpu.core_type<tc>} {
    %cst = arith.constant 0.000000e+00 : f32
    %0 = vector.broadcast %cst : f32 to vector<8x32xf32>
    %cst_0 = arith.constant 0.000000e+00 : f32
    %1 = vector.broadcast %cst_0 : f32 to vector<8x32xf32>
    %cst_1 = arith.constant 0.000000e+00 : f32
    %2 = vector.broadcast %cst_1 : f32 to vector<8x32xf32>
    %cst_2 = arith.constant 0.000000e+00 : f32
    %3 = vector.broadcast %cst_2 : f32 to vector<8x32xf32>
    %cst_3 = arith.constant 0.000000e+00 : f32
    %4 = vector.broadcast %cst_3 : f32 to vector<8x32xf32>
    %cst_4 = arith.constant 0.000000e+00 : f32
    %5 = vector.broadcast %cst_4 : f32 to vector<8x32xf32>
    %c0 = arith.constant 0 : index
    %c0_5 = arith.constant 0 : index
    %6 = vector.load %arg0[%c0, %c0_5] : memref<64x32xf32, #tpu.memory_space<vmem>>, vector<8x32xf32>
    %c0_6 = arith.constant 0 : index
    %c0_7 = arith.constant 0 : index
    %7 = vector.load %arg1[%c0_6, %c0_7] : memref<216x128xf32, #tpu.memory_space<vmem>>, vector<32x128xf32>
    %cst_8 = arith.constant dense<0.000000e+00> : vector<8x128xf32>
    %8 = tpu.matmul %6, %7, %cst_8 {dimension_numbers = #tpu.dot_dimension_numbers<[1], [0], [0], [1], [0, 0, 1, 1], [], []>} : vector<8x32xf32>, vector<32x128xf32>, vector<8x128xf32> -> vector<8x128xf32>
    %c32 = arith.constant 32 : index
    %c0_9 = arith.constant 0 : index
    %9 = vector.load %arg1[%c32, %c0_9] : memref<216x128xf32, #tpu.memory_space<vmem>>, vector<32x128xf32>
    %cst_10 = arith.constant dense<0.000000e+00> : vector<8x128xf32>
    %10 = tpu.matmul %0, %9, %cst_10 {dimension_numbers = #tpu.dot_dimension_numbers<[1], [0], [0], [1], [0, 0, 1, 1], [], []>} : vector<8x32xf32>, vector<32x128xf32>, vector<8x128xf32> -> vector<8x128xf32>
    %11 = arith.addf %8, %10 : vector<8x128xf32>
    %c64 = arith.constant 64 : index
    %c0_11 = arith.constant 0 : index
    %12 = vector.load %arg1[%c64, %c0_11] : memref<216x128xf32, #tpu.memory_space<vmem>>, vector<1x128xf32>
    %13 = vector.broadcast %12 : vector<1x128xf32> to vector<8x128xf32>
    %14 = arith.addf %11, %13 : vector<8x128xf32>
    %15 = arith.negf %14 : vector<8x128xf32>
    %16 = math.exp %15 : vector<8x128xf32>
    %cst_12 = arith.constant 1.000000e+00 : f32
    %17 = vector.broadcast %cst_12 : f32 to vector<8x128xf32>
    %18 = arith.addf %17, %16 : vector<8x128xf32>
    %19 = arith.divf %17, %18 : vector<8x128xf32>
    %20 = math.tanh %14 : vector<8x128xf32>
    %21 = vector.extract_strided_slice %19 {offsets = [0, 0], sizes = [8, 32], strides = [1, 1]} : vector<8x128xf32> to vector<8x32xf32>
    %22 = vector.extract_strided_slice %19 {offsets = [0, 32], sizes = [8, 32], strides = [1, 1]} : vector<8x128xf32> to vector<8x32xf32>
    %23 = vector.extract_strided_slice %19 {offsets = [0, 96], sizes = [8, 32], strides = [1, 1]} : vector<8x128xf32> to vector<8x32xf32>
    %24 = vector.extract_strided_slice %20 {offsets = [0, 64], sizes = [8, 32], strides = [1, 1]} : vector<8x128xf32> to vector<8x32xf32>
    %25 = arith.mulf %22, %3 : vector<8x32xf32>
    %26 = arith.mulf %21, %24 : vector<8x32xf32>
    %27 = arith.addf %25, %26 : vector<8x32xf32>
    %28 = math.tanh %27 : vector<8x32xf32>
    %29 = arith.mulf %23, %28 : vector<8x32xf32>
    %c8 = arith.constant 8 : index
    %c0_13 = arith.constant 0 : index
    %30 = vector.load %arg0[%c8, %c0_13] : memref<64x32xf32, #tpu.memory_space<vmem>>, vector<8x32xf32>
    %c0_14 = arith.constant 0 : index
    %c0_15 = arith.constant 0 : index
    %31 = vector.load %arg1[%c0_14, %c0_15] : memref<216x128xf32, #tpu.memory_space<vmem>>, vector<32x128xf32>
    %cst_16 = arith.constant dense<0.000000e+00> : vector<8x128xf32>
    %32 = tpu.matmul %30, %31, %cst_16 {dimension_numbers = #tpu.dot_dimension_numbers<[1], [0], [0], [1], [0, 0, 1, 1], [], []>} : vector<8x32xf32>, vector<32x128xf32>, vector<8x128xf32> -> vector<8x128xf32>
    %c32_17 = arith.constant 32 : index
    %c0_18 = arith.constant 0 : index
    %33 = vector.load %arg1[%c32_17, %c0_18] : memref<216x128xf32, #tpu.memory_space<vmem>>, vector<32x128xf32>
    %cst_19 = arith.constant dense<0.000000e+00> : vector<8x128xf32>
    %34 = tpu.matmul %29, %33, %cst_19 {dimension_numbers = #tpu.dot_dimension_numbers<[1], [0], [0], [1], [0, 0, 1, 1], [], []>} : vector<8x32xf32>, vector<32x128xf32>, vector<8x128xf32> -> vector<8x128xf32>
    %35 = arith.addf %32, %34 : vector<8x128xf32>
    %c64_20 = arith.constant 64 : index
    %c0_21 = arith.constant 0 : index
    %36 = vector.load %arg1[%c64_20, %c0_21] : memref<216x128xf32, #tpu.memory_space<vmem>>, vector<1x128xf32>
    %37 = vector.broadcast %36 : vector<1x128xf32> to vector<8x128xf32>
    %38 = arith.addf %35, %37 : vector<8x128xf32>
    %39 = arith.negf %38 : vector<8x128xf32>
    %40 = math.exp %39 : vector<8x128xf32>
    %cst_22 = arith.constant 1.000000e+00 : f32
    %41 = vector.broadcast %cst_22 : f32 to vector<8x128xf32>
    %42 = arith.addf %41, %40 : vector<8x128xf32>
    %43 = arith.divf %41, %42 : vector<8x128xf32>
    %44 = math.tanh %38 : vector<8x128xf32>
    %45 = vector.extract_strided_slice %43 {offsets = [0, 0], sizes = [8, 32], strides = [1, 1]} : vector<8x128xf32> to vector<8x32xf32>
    %46 = vector.extract_strided_slice %43 {offsets = [0, 32], sizes = [8, 32], strides = [1, 1]} : vector<8x128xf32> to vector<8x32xf32>
    %47 = vector.extract_strided_slice %43 {offsets = [0, 96], sizes = [8, 32], strides = [1, 1]} : vector<8x128xf32> to vector<8x32xf32>
    %48 = vector.extract_strided_slice %44 {offsets = [0, 64], sizes = [8, 32], strides = [1, 1]} : vector<8x128xf32> to vector<8x32xf32>
    %49 = arith.mulf %46, %27 : vector<8x32xf32>
    %50 = arith.mulf %45, %48 : vector<8x32xf32>
    %51 = arith.addf %49, %50 : vector<8x32xf32>
    %52 = math.tanh %51 : vector<8x32xf32>
    %53 = arith.mulf %47, %52 : vector<8x32xf32>
    %c72 = arith.constant 72 : index
    %c0_23 = arith.constant 0 : index
    %54 = vector.load %arg1[%c72, %c0_23] : memref<216x128xf32, #tpu.memory_space<vmem>>, vector<32x128xf32>
    %cst_24 = arith.constant dense<0.000000e+00> : vector<8x128xf32>
    %55 = tpu.matmul %29, %54, %cst_24 {dimension_numbers = #tpu.dot_dimension_numbers<[1], [0], [0], [1], [0, 0, 1, 1], [], []>} : vector<8x32xf32>, vector<32x128xf32>, vector<8x128xf32> -> vector<8x128xf32>
    %c104 = arith.constant 104 : index
    %c0_25 = arith.constant 0 : index
    %56 = vector.load %arg1[%c104, %c0_25] : memref<216x128xf32, #tpu.memory_space<vmem>>, vector<32x128xf32>
    %cst_26 = arith.constant dense<0.000000e+00> : vector<8x128xf32>
    %57 = tpu.matmul %1, %56, %cst_26 {dimension_numbers = #tpu.dot_dimension_numbers<[1], [0], [0], [1], [0, 0, 1, 1], [], []>} : vector<8x32xf32>, vector<32x128xf32>, vector<8x128xf32> -> vector<8x128xf32>
    %58 = arith.addf %55, %57 : vector<8x128xf32>
    %c136 = arith.constant 136 : index
    %c0_27 = arith.constant 0 : index
    %59 = vector.load %arg1[%c136, %c0_27] : memref<216x128xf32, #tpu.memory_space<vmem>>, vector<1x128xf32>
    %60 = vector.broadcast %59 : vector<1x128xf32> to vector<8x128xf32>
    %61 = arith.addf %58, %60 : vector<8x128xf32>
    %62 = arith.negf %61 : vector<8x128xf32>
    %63 = math.exp %62 : vector<8x128xf32>
    %cst_28 = arith.constant 1.000000e+00 : f32
    %64 = vector.broadcast %cst_28 : f32 to vector<8x128xf32>
    %65 = arith.addf %64, %63 : vector<8x128xf32>
    %66 = arith.divf %64, %65 : vector<8x128xf32>
    %67 = math.tanh %61 : vector<8x128xf32>
    %68 = vector.extract_strided_slice %66 {offsets = [0, 0], sizes = [8, 32], strides = [1, 1]} : vector<8x128xf32> to vector<8x32xf32>
    %69 = vector.extract_strided_slice %66 {offsets = [0, 32], sizes = [8, 32], strides = [1, 1]} : vector<8x128xf32> to vector<8x32xf32>
    %70 = vector.extract_strided_slice %66 {offsets = [0, 96], sizes = [8, 32], strides = [1, 1]} : vector<8x128xf32> to vector<8x32xf32>
    %71 = vector.extract_strided_slice %67 {offsets = [0, 64], sizes = [8, 32], strides = [1, 1]} : vector<8x128xf32> to vector<8x32xf32>
    %72 = arith.mulf %69, %4 : vector<8x32xf32>
    %73 = arith.mulf %68, %71 : vector<8x32xf32>
    %74 = arith.addf %72, %73 : vector<8x32xf32>
    %75 = math.tanh %74 : vector<8x32xf32>
    %76 = arith.mulf %70, %75 : vector<8x32xf32>
    %c16 = arith.constant 16 : index
    %c0_29 = arith.constant 0 : index
    %77 = vector.load %arg0[%c16, %c0_29] : memref<64x32xf32, #tpu.memory_space<vmem>>, vector<8x32xf32>
    %c0_30 = arith.constant 0 : index
    %c0_31 = arith.constant 0 : index
    %78 = vector.load %arg1[%c0_30, %c0_31] : memref<216x128xf32, #tpu.memory_space<vmem>>, vector<32x128xf32>
    %cst_32 = arith.constant dense<0.000000e+00> : vector<8x128xf32>
    %79 = tpu.matmul %77, %78, %cst_32 {dimension_numbers = #tpu.dot_dimension_numbers<[1], [0], [0], [1], [0, 0, 1, 1], [], []>} : vector<8x32xf32>, vector<32x128xf32>, vector<8x128xf32> -> vector<8x128xf32>
    %c32_33 = arith.constant 32 : index
    %c0_34 = arith.constant 0 : index
    %80 = vector.load %arg1[%c32_33, %c0_34] : memref<216x128xf32, #tpu.memory_space<vmem>>, vector<32x128xf32>
    %cst_35 = arith.constant dense<0.000000e+00> : vector<8x128xf32>
    %81 = tpu.matmul %53, %80, %cst_35 {dimension_numbers = #tpu.dot_dimension_numbers<[1], [0], [0], [1], [0, 0, 1, 1], [], []>} : vector<8x32xf32>, vector<32x128xf32>, vector<8x128xf32> -> vector<8x128xf32>
    %82 = arith.addf %79, %81 : vector<8x128xf32>
    %c64_36 = arith.constant 64 : index
    %c0_37 = arith.constant 0 : index
    %83 = vector.load %arg1[%c64_36, %c0_37] : memref<216x128xf32, #tpu.memory_space<vmem>>, vector<1x128xf32>
    %84 = vector.broadcast %83 : vector<1x128xf32> to vector<8x128xf32>
    %85 = arith.addf %82, %84 : vector<8x128xf32>
    %86 = arith.negf %85 : vector<8x128xf32>
    %87 = math.exp %86 : vector<8x128xf32>
    %cst_38 = arith.constant 1.000000e+00 : f32
    %88 = vector.broadcast %cst_38 : f32 to vector<8x128xf32>
    %89 = arith.addf %88, %87 : vector<8x128xf32>
    %90 = arith.divf %88, %89 : vector<8x128xf32>
    %91 = math.tanh %85 : vector<8x128xf32>
    %92 = vector.extract_strided_slice %90 {offsets = [0, 0], sizes = [8, 32], strides = [1, 1]} : vector<8x128xf32> to vector<8x32xf32>
    %93 = vector.extract_strided_slice %90 {offsets = [0, 32], sizes = [8, 32], strides = [1, 1]} : vector<8x128xf32> to vector<8x32xf32>
    %94 = vector.extract_strided_slice %90 {offsets = [0, 96], sizes = [8, 32], strides = [1, 1]} : vector<8x128xf32> to vector<8x32xf32>
    %95 = vector.extract_strided_slice %91 {offsets = [0, 64], sizes = [8, 32], strides = [1, 1]} : vector<8x128xf32> to vector<8x32xf32>
    %96 = arith.mulf %93, %51 : vector<8x32xf32>
    %97 = arith.mulf %92, %95 : vector<8x32xf32>
    %98 = arith.addf %96, %97 : vector<8x32xf32>
    %99 = math.tanh %98 : vector<8x32xf32>
    %100 = arith.mulf %94, %99 : vector<8x32xf32>
    %c72_39 = arith.constant 72 : index
    %c0_40 = arith.constant 0 : index
    %101 = vector.load %arg1[%c72_39, %c0_40] : memref<216x128xf32, #tpu.memory_space<vmem>>, vector<32x128xf32>
    %cst_41 = arith.constant dense<0.000000e+00> : vector<8x128xf32>
    %102 = tpu.matmul %53, %101, %cst_41 {dimension_numbers = #tpu.dot_dimension_numbers<[1], [0], [0], [1], [0, 0, 1, 1], [], []>} : vector<8x32xf32>, vector<32x128xf32>, vector<8x128xf32> -> vector<8x128xf32>
    %c104_42 = arith.constant 104 : index
    %c0_43 = arith.constant 0 : index
    %103 = vector.load %arg1[%c104_42, %c0_43] : memref<216x128xf32, #tpu.memory_space<vmem>>, vector<32x128xf32>
    %cst_44 = arith.constant dense<0.000000e+00> : vector<8x128xf32>
    %104 = tpu.matmul %76, %103, %cst_44 {dimension_numbers = #tpu.dot_dimension_numbers<[1], [0], [0], [1], [0, 0, 1, 1], [], []>} : vector<8x32xf32>, vector<32x128xf32>, vector<8x128xf32> -> vector<8x128xf32>
    %105 = arith.addf %102, %104 : vector<8x128xf32>
    %c136_45 = arith.constant 136 : index
    %c0_46 = arith.constant 0 : index
    %106 = vector.load %arg1[%c136_45, %c0_46] : memref<216x128xf32, #tpu.memory_space<vmem>>, vector<1x128xf32>
    %107 = vector.broadcast %106 : vector<1x128xf32> to vector<8x128xf32>
    %108 = arith.addf %105, %107 : vector<8x128xf32>
    %109 = arith.negf %108 : vector<8x128xf32>
    %110 = math.exp %109 : vector<8x128xf32>
    %cst_47 = arith.constant 1.000000e+00 : f32
    %111 = vector.broadcast %cst_47 : f32 to vector<8x128xf32>
    %112 = arith.addf %111, %110 : vector<8x128xf32>
    %113 = arith.divf %111, %112 : vector<8x128xf32>
    %114 = math.tanh %108 : vector<8x128xf32>
    %115 = vector.extract_strided_slice %113 {offsets = [0, 0], sizes = [8, 32], strides = [1, 1]} : vector<8x128xf32> to vector<8x32xf32>
    %116 = vector.extract_strided_slice %113 {offsets = [0, 32], sizes = [8, 32], strides = [1, 1]} : vector<8x128xf32> to vector<8x32xf32>
    %117 = vector.extract_strided_slice %113 {offsets = [0, 96], sizes = [8, 32], strides = [1, 1]} : vector<8x128xf32> to vector<8x32xf32>
    %118 = vector.extract_strided_slice %114 {offsets = [0, 64], sizes = [8, 32], strides = [1, 1]} : vector<8x128xf32> to vector<8x32xf32>
    %119 = arith.mulf %116, %74 : vector<8x32xf32>
    %120 = arith.mulf %115, %118 : vector<8x32xf32>
    %121 = arith.addf %119, %120 : vector<8x32xf32>
    %122 = math.tanh %121 : vector<8x32xf32>
    %123 = arith.mulf %117, %122 : vector<8x32xf32>
    %c144 = arith.constant 144 : index
    %c0_48 = arith.constant 0 : index
    %124 = vector.load %arg1[%c144, %c0_48] : memref<216x128xf32, #tpu.memory_space<vmem>>, vector<32x128xf32>
    %cst_49 = arith.constant dense<0.000000e+00> : vector<8x128xf32>
    %125 = tpu.matmul %76, %124, %cst_49 {dimension_numbers = #tpu.dot_dimension_numbers<[1], [0], [0], [1], [0, 0, 1, 1], [], []>} : vector<8x32xf32>, vector<32x128xf32>, vector<8x128xf32> -> vector<8x128xf32>
    %c176 = arith.constant 176 : index
    %c0_50 = arith.constant 0 : index
    %126 = vector.load %arg1[%c176, %c0_50] : memref<216x128xf32, #tpu.memory_space<vmem>>, vector<32x128xf32>
    %cst_51 = arith.constant dense<0.000000e+00> : vector<8x128xf32>
    %127 = tpu.matmul %2, %126, %cst_51 {dimension_numbers = #tpu.dot_dimension_numbers<[1], [0], [0], [1], [0, 0, 1, 1], [], []>} : vector<8x32xf32>, vector<32x128xf32>, vector<8x128xf32> -> vector<8x128xf32>
    %128 = arith.addf %125, %127 : vector<8x128xf32>
    %c208 = arith.constant 208 : index
    %c0_52 = arith.constant 0 : index
    %129 = vector.load %arg1[%c208, %c0_52] : memref<216x128xf32, #tpu.memory_space<vmem>>, vector<1x128xf32>
    %130 = vector.broadcast %129 : vector<1x128xf32> to vector<8x128xf32>
    %131 = arith.addf %128, %130 : vector<8x128xf32>
    %132 = arith.negf %131 : vector<8x128xf32>
    %133 = math.exp %132 : vector<8x128xf32>
    %cst_53 = arith.constant 1.000000e+00 : f32
    %134 = vector.broadcast %cst_53 : f32 to vector<8x128xf32>
    %135 = arith.addf %134, %133 : vector<8x128xf32>
    %136 = arith.divf %134, %135 : vector<8x128xf32>
    %137 = math.tanh %131 : vector<8x128xf32>
    %138 = vector.extract_strided_slice %136 {offsets = [0, 0], sizes = [8, 32], strides = [1, 1]} : vector<8x128xf32> to vector<8x32xf32>
    %139 = vector.extract_strided_slice %136 {offsets = [0, 32], sizes = [8, 32], strides = [1, 1]} : vector<8x128xf32> to vector<8x32xf32>
    %140 = vector.extract_strided_slice %136 {offsets = [0, 96], sizes = [8, 32], strides = [1, 1]} : vector<8x128xf32> to vector<8x32xf32>
    %141 = vector.extract_strided_slice %137 {offsets = [0, 64], sizes = [8, 32], strides = [1, 1]} : vector<8x128xf32> to vector<8x32xf32>
    %142 = arith.mulf %139, %5 : vector<8x32xf32>
    %143 = arith.mulf %138, %141 : vector<8x32xf32>
    %144 = arith.addf %142, %143 : vector<8x32xf32>
    %145 = math.tanh %144 : vector<8x32xf32>
    %146 = arith.mulf %140, %145 : vector<8x32xf32>
    %c24 = arith.constant 24 : index
    %c0_54 = arith.constant 0 : index
    %147 = vector.load %arg0[%c24, %c0_54] : memref<64x32xf32, #tpu.memory_space<vmem>>, vector<8x32xf32>
    %c0_55 = arith.constant 0 : index
    %c0_56 = arith.constant 0 : index
    %148 = vector.load %arg1[%c0_55, %c0_56] : memref<216x128xf32, #tpu.memory_space<vmem>>, vector<32x128xf32>
    %cst_57 = arith.constant dense<0.000000e+00> : vector<8x128xf32>
    %149 = tpu.matmul %147, %148, %cst_57 {dimension_numbers = #tpu.dot_dimension_numbers<[1], [0], [0], [1], [0, 0, 1, 1], [], []>} : vector<8x32xf32>, vector<32x128xf32>, vector<8x128xf32> -> vector<8x128xf32>
    %c32_58 = arith.constant 32 : index
    %c0_59 = arith.constant 0 : index
    %150 = vector.load %arg1[%c32_58, %c0_59] : memref<216x128xf32, #tpu.memory_space<vmem>>, vector<32x128xf32>
    %cst_60 = arith.constant dense<0.000000e+00> : vector<8x128xf32>
    %151 = tpu.matmul %100, %150, %cst_60 {dimension_numbers = #tpu.dot_dimension_numbers<[1], [0], [0], [1], [0, 0, 1, 1], [], []>} : vector<8x32xf32>, vector<32x128xf32>, vector<8x128xf32> -> vector<8x128xf32>
    %152 = arith.addf %149, %151 : vector<8x128xf32>
    %c64_61 = arith.constant 64 : index
    %c0_62 = arith.constant 0 : index
    %153 = vector.load %arg1[%c64_61, %c0_62] : memref<216x128xf32, #tpu.memory_space<vmem>>, vector<1x128xf32>
    %154 = vector.broadcast %153 : vector<1x128xf32> to vector<8x128xf32>
    %155 = arith.addf %152, %154 : vector<8x128xf32>
    %156 = arith.negf %155 : vector<8x128xf32>
    %157 = math.exp %156 : vector<8x128xf32>
    %cst_63 = arith.constant 1.000000e+00 : f32
    %158 = vector.broadcast %cst_63 : f32 to vector<8x128xf32>
    %159 = arith.addf %158, %157 : vector<8x128xf32>
    %160 = arith.divf %158, %159 : vector<8x128xf32>
    %161 = math.tanh %155 : vector<8x128xf32>
    %162 = vector.extract_strided_slice %160 {offsets = [0, 0], sizes = [8, 32], strides = [1, 1]} : vector<8x128xf32> to vector<8x32xf32>
    %163 = vector.extract_strided_slice %160 {offsets = [0, 32], sizes = [8, 32], strides = [1, 1]} : vector<8x128xf32> to vector<8x32xf32>
    %164 = vector.extract_strided_slice %160 {offsets = [0, 96], sizes = [8, 32], strides = [1, 1]} : vector<8x128xf32> to vector<8x32xf32>
    %165 = vector.extract_strided_slice %161 {offsets = [0, 64], sizes = [8, 32], strides = [1, 1]} : vector<8x128xf32> to vector<8x32xf32>
    %166 = arith.mulf %163, %98 : vector<8x32xf32>
    %167 = arith.mulf %162, %165 : vector<8x32xf32>
    %168 = arith.addf %166, %167 : vector<8x32xf32>
    %169 = math.tanh %168 : vector<8x32xf32>
    %170 = arith.mulf %164, %169 : vector<8x32xf32>
    %c72_64 = arith.constant 72 : index
    %c0_65 = arith.constant 0 : index
    %171 = vector.load %arg1[%c72_64, %c0_65] : memref<216x128xf32, #tpu.memory_space<vmem>>, vector<32x128xf32>
    %cst_66 = arith.constant dense<0.000000e+00> : vector<8x128xf32>
    %172 = tpu.matmul %100, %171, %cst_66 {dimension_numbers = #tpu.dot_dimension_numbers<[1], [0], [0], [1], [0, 0, 1, 1], [], []>} : vector<8x32xf32>, vector<32x128xf32>, vector<8x128xf32> -> vector<8x128xf32>
    %c104_67 = arith.constant 104 : index
    %c0_68 = arith.constant 0 : index
    %173 = vector.load %arg1[%c104_67, %c0_68] : memref<216x128xf32, #tpu.memory_space<vmem>>, vector<32x128xf32>
    %cst_69 = arith.constant dense<0.000000e+00> : vector<8x128xf32>
    %174 = tpu.matmul %123, %173, %cst_69 {dimension_numbers = #tpu.dot_dimension_numbers<[1], [0], [0], [1], [0, 0, 1, 1], [], []>} : vector<8x32xf32>, vector<32x128xf32>, vector<8x128xf32> -> vector<8x128xf32>
    %175 = arith.addf %172, %174 : vector<8x128xf32>
    %c136_70 = arith.constant 136 : index
    %c0_71 = arith.constant 0 : index
    %176 = vector.load %arg1[%c136_70, %c0_71] : memref<216x128xf32, #tpu.memory_space<vmem>>, vector<1x128xf32>
    %177 = vector.broadcast %176 : vector<1x128xf32> to vector<8x128xf32>
    %178 = arith.addf %175, %177 : vector<8x128xf32>
    %179 = arith.negf %178 : vector<8x128xf32>
    %180 = math.exp %179 : vector<8x128xf32>
    %cst_72 = arith.constant 1.000000e+00 : f32
    %181 = vector.broadcast %cst_72 : f32 to vector<8x128xf32>
    %182 = arith.addf %181, %180 : vector<8x128xf32>
    %183 = arith.divf %181, %182 : vector<8x128xf32>
    %184 = math.tanh %178 : vector<8x128xf32>
    %185 = vector.extract_strided_slice %183 {offsets = [0, 0], sizes = [8, 32], strides = [1, 1]} : vector<8x128xf32> to vector<8x32xf32>
    %186 = vector.extract_strided_slice %183 {offsets = [0, 32], sizes = [8, 32], strides = [1, 1]} : vector<8x128xf32> to vector<8x32xf32>
    %187 = vector.extract_strided_slice %183 {offsets = [0, 96], sizes = [8, 32], strides = [1, 1]} : vector<8x128xf32> to vector<8x32xf32>
    %188 = vector.extract_strided_slice %184 {offsets = [0, 64], sizes = [8, 32], strides = [1, 1]} : vector<8x128xf32> to vector<8x32xf32>
    %189 = arith.mulf %186, %121 : vector<8x32xf32>
    %190 = arith.mulf %185, %188 : vector<8x32xf32>
    %191 = arith.addf %189, %190 : vector<8x32xf32>
    %192 = math.tanh %191 : vector<8x32xf32>
    %193 = arith.mulf %187, %192 : vector<8x32xf32>
    %c144_73 = arith.constant 144 : index
    %c0_74 = arith.constant 0 : index
    %194 = vector.load %arg1[%c144_73, %c0_74] : memref<216x128xf32, #tpu.memory_space<vmem>>, vector<32x128xf32>
    %cst_75 = arith.constant dense<0.000000e+00> : vector<8x128xf32>
    %195 = tpu.matmul %123, %194, %cst_75 {dimension_numbers = #tpu.dot_dimension_numbers<[1], [0], [0], [1], [0, 0, 1, 1], [], []>} : vector<8x32xf32>, vector<32x128xf32>, vector<8x128xf32> -> vector<8x128xf32>
    %c176_76 = arith.constant 176 : index
    %c0_77 = arith.constant 0 : index
    %196 = vector.load %arg1[%c176_76, %c0_77] : memref<216x128xf32, #tpu.memory_space<vmem>>, vector<32x128xf32>
    %cst_78 = arith.constant dense<0.000000e+00> : vector<8x128xf32>
    %197 = tpu.matmul %146, %196, %cst_78 {dimension_numbers = #tpu.dot_dimension_numbers<[1], [0], [0], [1], [0, 0, 1, 1], [], []>} : vector<8x32xf32>, vector<32x128xf32>, vector<8x128xf32> -> vector<8x128xf32>
    %198 = arith.addf %195, %197 : vector<8x128xf32>
    %c208_79 = arith.constant 208 : index
    %c0_80 = arith.constant 0 : index
    %199 = vector.load %arg1[%c208_79, %c0_80] : memref<216x128xf32, #tpu.memory_space<vmem>>, vector<1x128xf32>
    %200 = vector.broadcast %199 : vector<1x128xf32> to vector<8x128xf32>
    %201 = arith.addf %198, %200 : vector<8x128xf32>
    %202 = arith.negf %201 : vector<8x128xf32>
    %203 = math.exp %202 : vector<8x128xf32>
    %cst_81 = arith.constant 1.000000e+00 : f32
    %204 = vector.broadcast %cst_81 : f32 to vector<8x128xf32>
    %205 = arith.addf %204, %203 : vector<8x128xf32>
    %206 = arith.divf %204, %205 : vector<8x128xf32>
    %207 = math.tanh %201 : vector<8x128xf32>
    %208 = vector.extract_strided_slice %206 {offsets = [0, 0], sizes = [8, 32], strides = [1, 1]} : vector<8x128xf32> to vector<8x32xf32>
    %209 = vector.extract_strided_slice %206 {offsets = [0, 32], sizes = [8, 32], strides = [1, 1]} : vector<8x128xf32> to vector<8x32xf32>
    %210 = vector.extract_strided_slice %206 {offsets = [0, 96], sizes = [8, 32], strides = [1, 1]} : vector<8x128xf32> to vector<8x32xf32>
    %211 = vector.extract_strided_slice %207 {offsets = [0, 64], sizes = [8, 32], strides = [1, 1]} : vector<8x128xf32> to vector<8x32xf32>
    %212 = arith.mulf %209, %144 : vector<8x32xf32>
    %213 = arith.mulf %208, %211 : vector<8x32xf32>
    %214 = arith.addf %212, %213 : vector<8x32xf32>
    %215 = math.tanh %214 : vector<8x32xf32>
    %216 = arith.mulf %210, %215 : vector<8x32xf32>
    %c32_82 = arith.constant 32 : index
    %c0_83 = arith.constant 0 : index
    %217 = vector.load %arg0[%c32_82, %c0_83] : memref<64x32xf32, #tpu.memory_space<vmem>>, vector<8x32xf32>
    %c0_84 = arith.constant 0 : index
    %c0_85 = arith.constant 0 : index
    %218 = vector.load %arg1[%c0_84, %c0_85] : memref<216x128xf32, #tpu.memory_space<vmem>>, vector<32x128xf32>
    %cst_86 = arith.constant dense<0.000000e+00> : vector<8x128xf32>
    %219 = tpu.matmul %217, %218, %cst_86 {dimension_numbers = #tpu.dot_dimension_numbers<[1], [0], [0], [1], [0, 0, 1, 1], [], []>} : vector<8x32xf32>, vector<32x128xf32>, vector<8x128xf32> -> vector<8x128xf32>
    %c32_87 = arith.constant 32 : index
    %c0_88 = arith.constant 0 : index
    %220 = vector.load %arg1[%c32_87, %c0_88] : memref<216x128xf32, #tpu.memory_space<vmem>>, vector<32x128xf32>
    %cst_89 = arith.constant dense<0.000000e+00> : vector<8x128xf32>
    %221 = tpu.matmul %170, %220, %cst_89 {dimension_numbers = #tpu.dot_dimension_numbers<[1], [0], [0], [1], [0, 0, 1, 1], [], []>} : vector<8x32xf32>, vector<32x128xf32>, vector<8x128xf32> -> vector<8x128xf32>
    %222 = arith.addf %219, %221 : vector<8x128xf32>
    %c64_90 = arith.constant 64 : index
    %c0_91 = arith.constant 0 : index
    %223 = vector.load %arg1[%c64_90, %c0_91] : memref<216x128xf32, #tpu.memory_space<vmem>>, vector<1x128xf32>
    %224 = vector.broadcast %223 : vector<1x128xf32> to vector<8x128xf32>
    %225 = arith.addf %222, %224 : vector<8x128xf32>
    %226 = arith.negf %225 : vector<8x128xf32>
    %227 = math.exp %226 : vector<8x128xf32>
    %cst_92 = arith.constant 1.000000e+00 : f32
    %228 = vector.broadcast %cst_92 : f32 to vector<8x128xf32>
    %229 = arith.addf %228, %227 : vector<8x128xf32>
    %230 = arith.divf %228, %229 : vector<8x128xf32>
    %231 = math.tanh %225 : vector<8x128xf32>
    %232 = vector.extract_strided_slice %230 {offsets = [0, 0], sizes = [8, 32], strides = [1, 1]} : vector<8x128xf32> to vector<8x32xf32>
    %233 = vector.extract_strided_slice %230 {offsets = [0, 32], sizes = [8, 32], strides = [1, 1]} : vector<8x128xf32> to vector<8x32xf32>
    %234 = vector.extract_strided_slice %230 {offsets = [0, 96], sizes = [8, 32], strides = [1, 1]} : vector<8x128xf32> to vector<8x32xf32>
    %235 = vector.extract_strided_slice %231 {offsets = [0, 64], sizes = [8, 32], strides = [1, 1]} : vector<8x128xf32> to vector<8x32xf32>
    %236 = arith.mulf %233, %168 : vector<8x32xf32>
    %237 = arith.mulf %232, %235 : vector<8x32xf32>
    %238 = arith.addf %236, %237 : vector<8x32xf32>
    %239 = math.tanh %238 : vector<8x32xf32>
    %240 = arith.mulf %234, %239 : vector<8x32xf32>
    %c72_93 = arith.constant 72 : index
    %c0_94 = arith.constant 0 : index
    %241 = vector.load %arg1[%c72_93, %c0_94] : memref<216x128xf32, #tpu.memory_space<vmem>>, vector<32x128xf32>
    %cst_95 = arith.constant dense<0.000000e+00> : vector<8x128xf32>
    %242 = tpu.matmul %170, %241, %cst_95 {dimension_numbers = #tpu.dot_dimension_numbers<[1], [0], [0], [1], [0, 0, 1, 1], [], []>} : vector<8x32xf32>, vector<32x128xf32>, vector<8x128xf32> -> vector<8x128xf32>
    %c104_96 = arith.constant 104 : index
    %c0_97 = arith.constant 0 : index
    %243 = vector.load %arg1[%c104_96, %c0_97] : memref<216x128xf32, #tpu.memory_space<vmem>>, vector<32x128xf32>
    %cst_98 = arith.constant dense<0.000000e+00> : vector<8x128xf32>
    %244 = tpu.matmul %193, %243, %cst_98 {dimension_numbers = #tpu.dot_dimension_numbers<[1], [0], [0], [1], [0, 0, 1, 1], [], []>} : vector<8x32xf32>, vector<32x128xf32>, vector<8x128xf32> -> vector<8x128xf32>
    %245 = arith.addf %242, %244 : vector<8x128xf32>
    %c136_99 = arith.constant 136 : index
    %c0_100 = arith.constant 0 : index
    %246 = vector.load %arg1[%c136_99, %c0_100] : memref<216x128xf32, #tpu.memory_space<vmem>>, vector<1x128xf32>
    %247 = vector.broadcast %246 : vector<1x128xf32> to vector<8x128xf32>
    %248 = arith.addf %245, %247 : vector<8x128xf32>
    %249 = arith.negf %248 : vector<8x128xf32>
    %250 = math.exp %249 : vector<8x128xf32>
    %cst_101 = arith.constant 1.000000e+00 : f32
    %251 = vector.broadcast %cst_101 : f32 to vector<8x128xf32>
    %252 = arith.addf %251, %250 : vector<8x128xf32>
    %253 = arith.divf %251, %252 : vector<8x128xf32>
    %254 = math.tanh %248 : vector<8x128xf32>
    %255 = vector.extract_strided_slice %253 {offsets = [0, 0], sizes = [8, 32], strides = [1, 1]} : vector<8x128xf32> to vector<8x32xf32>
    %256 = vector.extract_strided_slice %253 {offsets = [0, 32], sizes = [8, 32], strides = [1, 1]} : vector<8x128xf32> to vector<8x32xf32>
    %257 = vector.extract_strided_slice %253 {offsets = [0, 96], sizes = [8, 32], strides = [1, 1]} : vector<8x128xf32> to vector<8x32xf32>
    %258 = vector.extract_strided_slice %254 {offsets = [0, 64], sizes = [8, 32], strides = [1, 1]} : vector<8x128xf32> to vector<8x32xf32>
    %259 = arith.mulf %256, %191 : vector<8x32xf32>
    %260 = arith.mulf %255, %258 : vector<8x32xf32>
    %261 = arith.addf %259, %260 : vector<8x32xf32>
    %262 = math.tanh %261 : vector<8x32xf32>
    %263 = arith.mulf %257, %262 : vector<8x32xf32>
    %c144_102 = arith.constant 144 : index
    %c0_103 = arith.constant 0 : index
    %264 = vector.load %arg1[%c144_102, %c0_103] : memref<216x128xf32, #tpu.memory_space<vmem>>, vector<32x128xf32>
    %cst_104 = arith.constant dense<0.000000e+00> : vector<8x128xf32>
    %265 = tpu.matmul %193, %264, %cst_104 {dimension_numbers = #tpu.dot_dimension_numbers<[1], [0], [0], [1], [0, 0, 1, 1], [], []>} : vector<8x32xf32>, vector<32x128xf32>, vector<8x128xf32> -> vector<8x128xf32>
    %c176_105 = arith.constant 176 : index
    %c0_106 = arith.constant 0 : index
    %266 = vector.load %arg1[%c176_105, %c0_106] : memref<216x128xf32, #tpu.memory_space<vmem>>, vector<32x128xf32>
    %cst_107 = arith.constant dense<0.000000e+00> : vector<8x128xf32>
    %267 = tpu.matmul %216, %266, %cst_107 {dimension_numbers = #tpu.dot_dimension_numbers<[1], [0], [0], [1], [0, 0, 1, 1], [], []>} : vector<8x32xf32>, vector<32x128xf32>, vector<8x128xf32> -> vector<8x128xf32>
    %268 = arith.addf %265, %267 : vector<8x128xf32>
    %c208_108 = arith.constant 208 : index
    %c0_109 = arith.constant 0 : index
    %269 = vector.load %arg1[%c208_108, %c0_109] : memref<216x128xf32, #tpu.memory_space<vmem>>, vector<1x128xf32>
    %270 = vector.broadcast %269 : vector<1x128xf32> to vector<8x128xf32>
    %271 = arith.addf %268, %270 : vector<8x128xf32>
    %272 = arith.negf %271 : vector<8x128xf32>
    %273 = math.exp %272 : vector<8x128xf32>
    %cst_110 = arith.constant 1.000000e+00 : f32
    %274 = vector.broadcast %cst_110 : f32 to vector<8x128xf32>
    %275 = arith.addf %274, %273 : vector<8x128xf32>
    %276 = arith.divf %274, %275 : vector<8x128xf32>
    %277 = math.tanh %271 : vector<8x128xf32>
    %278 = vector.extract_strided_slice %276 {offsets = [0, 0], sizes = [8, 32], strides = [1, 1]} : vector<8x128xf32> to vector<8x32xf32>
    %279 = vector.extract_strided_slice %276 {offsets = [0, 32], sizes = [8, 32], strides = [1, 1]} : vector<8x128xf32> to vector<8x32xf32>
    %280 = vector.extract_strided_slice %276 {offsets = [0, 96], sizes = [8, 32], strides = [1, 1]} : vector<8x128xf32> to vector<8x32xf32>
    %281 = vector.extract_strided_slice %277 {offsets = [0, 64], sizes = [8, 32], strides = [1, 1]} : vector<8x128xf32> to vector<8x32xf32>
    %282 = arith.mulf %279, %214 : vector<8x32xf32>
    %283 = arith.mulf %278, %281 : vector<8x32xf32>
    %284 = arith.addf %282, %283 : vector<8x32xf32>
    %285 = math.tanh %284 : vector<8x32xf32>
    %286 = arith.mulf %280, %285 : vector<8x32xf32>
    %c40 = arith.constant 40 : index
    %c0_111 = arith.constant 0 : index
    %287 = vector.load %arg0[%c40, %c0_111] : memref<64x32xf32, #tpu.memory_space<vmem>>, vector<8x32xf32>
    %c0_112 = arith.constant 0 : index
    %c0_113 = arith.constant 0 : index
    %288 = vector.load %arg1[%c0_112, %c0_113] : memref<216x128xf32, #tpu.memory_space<vmem>>, vector<32x128xf32>
    %cst_114 = arith.constant dense<0.000000e+00> : vector<8x128xf32>
    %289 = tpu.matmul %287, %288, %cst_114 {dimension_numbers = #tpu.dot_dimension_numbers<[1], [0], [0], [1], [0, 0, 1, 1], [], []>} : vector<8x32xf32>, vector<32x128xf32>, vector<8x128xf32> -> vector<8x128xf32>
    %c32_115 = arith.constant 32 : index
    %c0_116 = arith.constant 0 : index
    %290 = vector.load %arg1[%c32_115, %c0_116] : memref<216x128xf32, #tpu.memory_space<vmem>>, vector<32x128xf32>
    %cst_117 = arith.constant dense<0.000000e+00> : vector<8x128xf32>
    %291 = tpu.matmul %240, %290, %cst_117 {dimension_numbers = #tpu.dot_dimension_numbers<[1], [0], [0], [1], [0, 0, 1, 1], [], []>} : vector<8x32xf32>, vector<32x128xf32>, vector<8x128xf32> -> vector<8x128xf32>
    %292 = arith.addf %289, %291 : vector<8x128xf32>
    %c64_118 = arith.constant 64 : index
    %c0_119 = arith.constant 0 : index
    %293 = vector.load %arg1[%c64_118, %c0_119] : memref<216x128xf32, #tpu.memory_space<vmem>>, vector<1x128xf32>
    %294 = vector.broadcast %293 : vector<1x128xf32> to vector<8x128xf32>
    %295 = arith.addf %292, %294 : vector<8x128xf32>
    %296 = arith.negf %295 : vector<8x128xf32>
    %297 = math.exp %296 : vector<8x128xf32>
    %cst_120 = arith.constant 1.000000e+00 : f32
    %298 = vector.broadcast %cst_120 : f32 to vector<8x128xf32>
    %299 = arith.addf %298, %297 : vector<8x128xf32>
    %300 = arith.divf %298, %299 : vector<8x128xf32>
    %301 = math.tanh %295 : vector<8x128xf32>
    %302 = vector.extract_strided_slice %300 {offsets = [0, 0], sizes = [8, 32], strides = [1, 1]} : vector<8x128xf32> to vector<8x32xf32>
    %303 = vector.extract_strided_slice %300 {offsets = [0, 32], sizes = [8, 32], strides = [1, 1]} : vector<8x128xf32> to vector<8x32xf32>
    %304 = vector.extract_strided_slice %300 {offsets = [0, 96], sizes = [8, 32], strides = [1, 1]} : vector<8x128xf32> to vector<8x32xf32>
    %305 = vector.extract_strided_slice %301 {offsets = [0, 64], sizes = [8, 32], strides = [1, 1]} : vector<8x128xf32> to vector<8x32xf32>
    %306 = arith.mulf %303, %238 : vector<8x32xf32>
    %307 = arith.mulf %302, %305 : vector<8x32xf32>
    %308 = arith.addf %306, %307 : vector<8x32xf32>
    %309 = math.tanh %308 : vector<8x32xf32>
    %310 = arith.mulf %304, %309 : vector<8x32xf32>
    %c72_121 = arith.constant 72 : index
    %c0_122 = arith.constant 0 : index
    %311 = vector.load %arg1[%c72_121, %c0_122] : memref<216x128xf32, #tpu.memory_space<vmem>>, vector<32x128xf32>
    %cst_123 = arith.constant dense<0.000000e+00> : vector<8x128xf32>
    %312 = tpu.matmul %240, %311, %cst_123 {dimension_numbers = #tpu.dot_dimension_numbers<[1], [0], [0], [1], [0, 0, 1, 1], [], []>} : vector<8x32xf32>, vector<32x128xf32>, vector<8x128xf32> -> vector<8x128xf32>
    %c104_124 = arith.constant 104 : index
    %c0_125 = arith.constant 0 : index
    %313 = vector.load %arg1[%c104_124, %c0_125] : memref<216x128xf32, #tpu.memory_space<vmem>>, vector<32x128xf32>
    %cst_126 = arith.constant dense<0.000000e+00> : vector<8x128xf32>
    %314 = tpu.matmul %263, %313, %cst_126 {dimension_numbers = #tpu.dot_dimension_numbers<[1], [0], [0], [1], [0, 0, 1, 1], [], []>} : vector<8x32xf32>, vector<32x128xf32>, vector<8x128xf32> -> vector<8x128xf32>
    %315 = arith.addf %312, %314 : vector<8x128xf32>
    %c136_127 = arith.constant 136 : index
    %c0_128 = arith.constant 0 : index
    %316 = vector.load %arg1[%c136_127, %c0_128] : memref<216x128xf32, #tpu.memory_space<vmem>>, vector<1x128xf32>
    %317 = vector.broadcast %316 : vector<1x128xf32> to vector<8x128xf32>
    %318 = arith.addf %315, %317 : vector<8x128xf32>
    %319 = arith.negf %318 : vector<8x128xf32>
    %320 = math.exp %319 : vector<8x128xf32>
    %cst_129 = arith.constant 1.000000e+00 : f32
    %321 = vector.broadcast %cst_129 : f32 to vector<8x128xf32>
    %322 = arith.addf %321, %320 : vector<8x128xf32>
    %323 = arith.divf %321, %322 : vector<8x128xf32>
    %324 = math.tanh %318 : vector<8x128xf32>
    %325 = vector.extract_strided_slice %323 {offsets = [0, 0], sizes = [8, 32], strides = [1, 1]} : vector<8x128xf32> to vector<8x32xf32>
    %326 = vector.extract_strided_slice %323 {offsets = [0, 32], sizes = [8, 32], strides = [1, 1]} : vector<8x128xf32> to vector<8x32xf32>
    %327 = vector.extract_strided_slice %323 {offsets = [0, 96], sizes = [8, 32], strides = [1, 1]} : vector<8x128xf32> to vector<8x32xf32>
    %328 = vector.extract_strided_slice %324 {offsets = [0, 64], sizes = [8, 32], strides = [1, 1]} : vector<8x128xf32> to vector<8x32xf32>
    %329 = arith.mulf %326, %261 : vector<8x32xf32>
    %330 = arith.mulf %325, %328 : vector<8x32xf32>
    %331 = arith.addf %329, %330 : vector<8x32xf32>
    %332 = math.tanh %331 : vector<8x32xf32>
    %333 = arith.mulf %327, %332 : vector<8x32xf32>
    %c144_130 = arith.constant 144 : index
    %c0_131 = arith.constant 0 : index
    %334 = vector.load %arg1[%c144_130, %c0_131] : memref<216x128xf32, #tpu.memory_space<vmem>>, vector<32x128xf32>
    %cst_132 = arith.constant dense<0.000000e+00> : vector<8x128xf32>
    %335 = tpu.matmul %263, %334, %cst_132 {dimension_numbers = #tpu.dot_dimension_numbers<[1], [0], [0], [1], [0, 0, 1, 1], [], []>} : vector<8x32xf32>, vector<32x128xf32>, vector<8x128xf32> -> vector<8x128xf32>
    %c176_133 = arith.constant 176 : index
    %c0_134 = arith.constant 0 : index
    %336 = vector.load %arg1[%c176_133, %c0_134] : memref<216x128xf32, #tpu.memory_space<vmem>>, vector<32x128xf32>
    %cst_135 = arith.constant dense<0.000000e+00> : vector<8x128xf32>
    %337 = tpu.matmul %286, %336, %cst_135 {dimension_numbers = #tpu.dot_dimension_numbers<[1], [0], [0], [1], [0, 0, 1, 1], [], []>} : vector<8x32xf32>, vector<32x128xf32>, vector<8x128xf32> -> vector<8x128xf32>
    %338 = arith.addf %335, %337 : vector<8x128xf32>
    %c208_136 = arith.constant 208 : index
    %c0_137 = arith.constant 0 : index
    %339 = vector.load %arg1[%c208_136, %c0_137] : memref<216x128xf32, #tpu.memory_space<vmem>>, vector<1x128xf32>
    %340 = vector.broadcast %339 : vector<1x128xf32> to vector<8x128xf32>
    %341 = arith.addf %338, %340 : vector<8x128xf32>
    %342 = arith.negf %341 : vector<8x128xf32>
    %343 = math.exp %342 : vector<8x128xf32>
    %cst_138 = arith.constant 1.000000e+00 : f32
    %344 = vector.broadcast %cst_138 : f32 to vector<8x128xf32>
    %345 = arith.addf %344, %343 : vector<8x128xf32>
    %346 = arith.divf %344, %345 : vector<8x128xf32>
    %347 = math.tanh %341 : vector<8x128xf32>
    %348 = vector.extract_strided_slice %346 {offsets = [0, 0], sizes = [8, 32], strides = [1, 1]} : vector<8x128xf32> to vector<8x32xf32>
    %349 = vector.extract_strided_slice %346 {offsets = [0, 32], sizes = [8, 32], strides = [1, 1]} : vector<8x128xf32> to vector<8x32xf32>
    %350 = vector.extract_strided_slice %346 {offsets = [0, 96], sizes = [8, 32], strides = [1, 1]} : vector<8x128xf32> to vector<8x32xf32>
    %351 = vector.extract_strided_slice %347 {offsets = [0, 64], sizes = [8, 32], strides = [1, 1]} : vector<8x128xf32> to vector<8x32xf32>
    %352 = arith.mulf %349, %284 : vector<8x32xf32>
    %353 = arith.mulf %348, %351 : vector<8x32xf32>
    %354 = arith.addf %352, %353 : vector<8x32xf32>
    %355 = math.tanh %354 : vector<8x32xf32>
    %356 = arith.mulf %350, %355 : vector<8x32xf32>
    %c48 = arith.constant 48 : index
    %c0_139 = arith.constant 0 : index
    %357 = vector.load %arg0[%c48, %c0_139] : memref<64x32xf32, #tpu.memory_space<vmem>>, vector<8x32xf32>
    %c0_140 = arith.constant 0 : index
    %c0_141 = arith.constant 0 : index
    %358 = vector.load %arg1[%c0_140, %c0_141] : memref<216x128xf32, #tpu.memory_space<vmem>>, vector<32x128xf32>
    %cst_142 = arith.constant dense<0.000000e+00> : vector<8x128xf32>
    %359 = tpu.matmul %357, %358, %cst_142 {dimension_numbers = #tpu.dot_dimension_numbers<[1], [0], [0], [1], [0, 0, 1, 1], [], []>} : vector<8x32xf32>, vector<32x128xf32>, vector<8x128xf32> -> vector<8x128xf32>
    %c32_143 = arith.constant 32 : index
    %c0_144 = arith.constant 0 : index
    %360 = vector.load %arg1[%c32_143, %c0_144] : memref<216x128xf32, #tpu.memory_space<vmem>>, vector<32x128xf32>
    %cst_145 = arith.constant dense<0.000000e+00> : vector<8x128xf32>
    %361 = tpu.matmul %310, %360, %cst_145 {dimension_numbers = #tpu.dot_dimension_numbers<[1], [0], [0], [1], [0, 0, 1, 1], [], []>} : vector<8x32xf32>, vector<32x128xf32>, vector<8x128xf32> -> vector<8x128xf32>
    %362 = arith.addf %359, %361 : vector<8x128xf32>
    %c64_146 = arith.constant 64 : index
    %c0_147 = arith.constant 0 : index
    %363 = vector.load %arg1[%c64_146, %c0_147] : memref<216x128xf32, #tpu.memory_space<vmem>>, vector<1x128xf32>
    %364 = vector.broadcast %363 : vector<1x128xf32> to vector<8x128xf32>
    %365 = arith.addf %362, %364 : vector<8x128xf32>
    %366 = arith.negf %365 : vector<8x128xf32>
    %367 = math.exp %366 : vector<8x128xf32>
    %cst_148 = arith.constant 1.000000e+00 : f32
    %368 = vector.broadcast %cst_148 : f32 to vector<8x128xf32>
    %369 = arith.addf %368, %367 : vector<8x128xf32>
    %370 = arith.divf %368, %369 : vector<8x128xf32>
    %371 = math.tanh %365 : vector<8x128xf32>
    %372 = vector.extract_strided_slice %370 {offsets = [0, 0], sizes = [8, 32], strides = [1, 1]} : vector<8x128xf32> to vector<8x32xf32>
    %373 = vector.extract_strided_slice %370 {offsets = [0, 32], sizes = [8, 32], strides = [1, 1]} : vector<8x128xf32> to vector<8x32xf32>
    %374 = vector.extract_strided_slice %370 {offsets = [0, 96], sizes = [8, 32], strides = [1, 1]} : vector<8x128xf32> to vector<8x32xf32>
    %375 = vector.extract_strided_slice %371 {offsets = [0, 64], sizes = [8, 32], strides = [1, 1]} : vector<8x128xf32> to vector<8x32xf32>
    %376 = arith.mulf %373, %308 : vector<8x32xf32>
    %377 = arith.mulf %372, %375 : vector<8x32xf32>
    %378 = arith.addf %376, %377 : vector<8x32xf32>
    %379 = math.tanh %378 : vector<8x32xf32>
    %380 = arith.mulf %374, %379 : vector<8x32xf32>
    %c72_149 = arith.constant 72 : index
    %c0_150 = arith.constant 0 : index
    %381 = vector.load %arg1[%c72_149, %c0_150] : memref<216x128xf32, #tpu.memory_space<vmem>>, vector<32x128xf32>
    %cst_151 = arith.constant dense<0.000000e+00> : vector<8x128xf32>
    %382 = tpu.matmul %310, %381, %cst_151 {dimension_numbers = #tpu.dot_dimension_numbers<[1], [0], [0], [1], [0, 0, 1, 1], [], []>} : vector<8x32xf32>, vector<32x128xf32>, vector<8x128xf32> -> vector<8x128xf32>
    %c104_152 = arith.constant 104 : index
    %c0_153 = arith.constant 0 : index
    %383 = vector.load %arg1[%c104_152, %c0_153] : memref<216x128xf32, #tpu.memory_space<vmem>>, vector<32x128xf32>
    %cst_154 = arith.constant dense<0.000000e+00> : vector<8x128xf32>
    %384 = tpu.matmul %333, %383, %cst_154 {dimension_numbers = #tpu.dot_dimension_numbers<[1], [0], [0], [1], [0, 0, 1, 1], [], []>} : vector<8x32xf32>, vector<32x128xf32>, vector<8x128xf32> -> vector<8x128xf32>
    %385 = arith.addf %382, %384 : vector<8x128xf32>
    %c136_155 = arith.constant 136 : index
    %c0_156 = arith.constant 0 : index
    %386 = vector.load %arg1[%c136_155, %c0_156] : memref<216x128xf32, #tpu.memory_space<vmem>>, vector<1x128xf32>
    %387 = vector.broadcast %386 : vector<1x128xf32> to vector<8x128xf32>
    %388 = arith.addf %385, %387 : vector<8x128xf32>
    %389 = arith.negf %388 : vector<8x128xf32>
    %390 = math.exp %389 : vector<8x128xf32>
    %cst_157 = arith.constant 1.000000e+00 : f32
    %391 = vector.broadcast %cst_157 : f32 to vector<8x128xf32>
    %392 = arith.addf %391, %390 : vector<8x128xf32>
    %393 = arith.divf %391, %392 : vector<8x128xf32>
    %394 = math.tanh %388 : vector<8x128xf32>
    %395 = vector.extract_strided_slice %393 {offsets = [0, 0], sizes = [8, 32], strides = [1, 1]} : vector<8x128xf32> to vector<8x32xf32>
    %396 = vector.extract_strided_slice %393 {offsets = [0, 32], sizes = [8, 32], strides = [1, 1]} : vector<8x128xf32> to vector<8x32xf32>
    %397 = vector.extract_strided_slice %393 {offsets = [0, 96], sizes = [8, 32], strides = [1, 1]} : vector<8x128xf32> to vector<8x32xf32>
    %398 = vector.extract_strided_slice %394 {offsets = [0, 64], sizes = [8, 32], strides = [1, 1]} : vector<8x128xf32> to vector<8x32xf32>
    %399 = arith.mulf %396, %331 : vector<8x32xf32>
    %400 = arith.mulf %395, %398 : vector<8x32xf32>
    %401 = arith.addf %399, %400 : vector<8x32xf32>
    %402 = math.tanh %401 : vector<8x32xf32>
    %403 = arith.mulf %397, %402 : vector<8x32xf32>
    %c144_158 = arith.constant 144 : index
    %c0_159 = arith.constant 0 : index
    %404 = vector.load %arg1[%c144_158, %c0_159] : memref<216x128xf32, #tpu.memory_space<vmem>>, vector<32x128xf32>
    %cst_160 = arith.constant dense<0.000000e+00> : vector<8x128xf32>
    %405 = tpu.matmul %333, %404, %cst_160 {dimension_numbers = #tpu.dot_dimension_numbers<[1], [0], [0], [1], [0, 0, 1, 1], [], []>} : vector<8x32xf32>, vector<32x128xf32>, vector<8x128xf32> -> vector<8x128xf32>
    %c176_161 = arith.constant 176 : index
    %c0_162 = arith.constant 0 : index
    %406 = vector.load %arg1[%c176_161, %c0_162] : memref<216x128xf32, #tpu.memory_space<vmem>>, vector<32x128xf32>
    %cst_163 = arith.constant dense<0.000000e+00> : vector<8x128xf32>
    %407 = tpu.matmul %356, %406, %cst_163 {dimension_numbers = #tpu.dot_dimension_numbers<[1], [0], [0], [1], [0, 0, 1, 1], [], []>} : vector<8x32xf32>, vector<32x128xf32>, vector<8x128xf32> -> vector<8x128xf32>
    %408 = arith.addf %405, %407 : vector<8x128xf32>
    %c208_164 = arith.constant 208 : index
    %c0_165 = arith.constant 0 : index
    %409 = vector.load %arg1[%c208_164, %c0_165] : memref<216x128xf32, #tpu.memory_space<vmem>>, vector<1x128xf32>
    %410 = vector.broadcast %409 : vector<1x128xf32> to vector<8x128xf32>
    %411 = arith.addf %408, %410 : vector<8x128xf32>
    %412 = arith.negf %411 : vector<8x128xf32>
    %413 = math.exp %412 : vector<8x128xf32>
    %cst_166 = arith.constant 1.000000e+00 : f32
    %414 = vector.broadcast %cst_166 : f32 to vector<8x128xf32>
    %415 = arith.addf %414, %413 : vector<8x128xf32>
    %416 = arith.divf %414, %415 : vector<8x128xf32>
    %417 = math.tanh %411 : vector<8x128xf32>
    %418 = vector.extract_strided_slice %416 {offsets = [0, 0], sizes = [8, 32], strides = [1, 1]} : vector<8x128xf32> to vector<8x32xf32>
    %419 = vector.extract_strided_slice %416 {offsets = [0, 32], sizes = [8, 32], strides = [1, 1]} : vector<8x128xf32> to vector<8x32xf32>
    %420 = vector.extract_strided_slice %416 {offsets = [0, 96], sizes = [8, 32], strides = [1, 1]} : vector<8x128xf32> to vector<8x32xf32>
    %421 = vector.extract_strided_slice %417 {offsets = [0, 64], sizes = [8, 32], strides = [1, 1]} : vector<8x128xf32> to vector<8x32xf32>
    %422 = arith.mulf %419, %354 : vector<8x32xf32>
    %423 = arith.mulf %418, %421 : vector<8x32xf32>
    %424 = arith.addf %422, %423 : vector<8x32xf32>
    %425 = math.tanh %424 : vector<8x32xf32>
    %426 = arith.mulf %420, %425 : vector<8x32xf32>
    %c56 = arith.constant 56 : index
    %c0_167 = arith.constant 0 : index
    %427 = vector.load %arg0[%c56, %c0_167] : memref<64x32xf32, #tpu.memory_space<vmem>>, vector<8x32xf32>
    %c0_168 = arith.constant 0 : index
    %c0_169 = arith.constant 0 : index
    %428 = vector.load %arg1[%c0_168, %c0_169] : memref<216x128xf32, #tpu.memory_space<vmem>>, vector<32x128xf32>
    %cst_170 = arith.constant dense<0.000000e+00> : vector<8x128xf32>
    %429 = tpu.matmul %427, %428, %cst_170 {dimension_numbers = #tpu.dot_dimension_numbers<[1], [0], [0], [1], [0, 0, 1, 1], [], []>} : vector<8x32xf32>, vector<32x128xf32>, vector<8x128xf32> -> vector<8x128xf32>
    %c32_171 = arith.constant 32 : index
    %c0_172 = arith.constant 0 : index
    %430 = vector.load %arg1[%c32_171, %c0_172] : memref<216x128xf32, #tpu.memory_space<vmem>>, vector<32x128xf32>
    %cst_173 = arith.constant dense<0.000000e+00> : vector<8x128xf32>
    %431 = tpu.matmul %380, %430, %cst_173 {dimension_numbers = #tpu.dot_dimension_numbers<[1], [0], [0], [1], [0, 0, 1, 1], [], []>} : vector<8x32xf32>, vector<32x128xf32>, vector<8x128xf32> -> vector<8x128xf32>
    %432 = arith.addf %429, %431 : vector<8x128xf32>
    %c64_174 = arith.constant 64 : index
    %c0_175 = arith.constant 0 : index
    %433 = vector.load %arg1[%c64_174, %c0_175] : memref<216x128xf32, #tpu.memory_space<vmem>>, vector<1x128xf32>
    %434 = vector.broadcast %433 : vector<1x128xf32> to vector<8x128xf32>
    %435 = arith.addf %432, %434 : vector<8x128xf32>
    %436 = arith.negf %435 : vector<8x128xf32>
    %437 = math.exp %436 : vector<8x128xf32>
    %cst_176 = arith.constant 1.000000e+00 : f32
    %438 = vector.broadcast %cst_176 : f32 to vector<8x128xf32>
    %439 = arith.addf %438, %437 : vector<8x128xf32>
    %440 = arith.divf %438, %439 : vector<8x128xf32>
    %441 = math.tanh %435 : vector<8x128xf32>
    %442 = vector.extract_strided_slice %440 {offsets = [0, 0], sizes = [8, 32], strides = [1, 1]} : vector<8x128xf32> to vector<8x32xf32>
    %443 = vector.extract_strided_slice %440 {offsets = [0, 32], sizes = [8, 32], strides = [1, 1]} : vector<8x128xf32> to vector<8x32xf32>
    %444 = vector.extract_strided_slice %440 {offsets = [0, 96], sizes = [8, 32], strides = [1, 1]} : vector<8x128xf32> to vector<8x32xf32>
    %445 = vector.extract_strided_slice %441 {offsets = [0, 64], sizes = [8, 32], strides = [1, 1]} : vector<8x128xf32> to vector<8x32xf32>
    %446 = arith.mulf %443, %378 : vector<8x32xf32>
    %447 = arith.mulf %442, %445 : vector<8x32xf32>
    %448 = arith.addf %446, %447 : vector<8x32xf32>
    %449 = math.tanh %448 : vector<8x32xf32>
    %450 = arith.mulf %444, %449 : vector<8x32xf32>
    %c72_177 = arith.constant 72 : index
    %c0_178 = arith.constant 0 : index
    %451 = vector.load %arg1[%c72_177, %c0_178] : memref<216x128xf32, #tpu.memory_space<vmem>>, vector<32x128xf32>
    %cst_179 = arith.constant dense<0.000000e+00> : vector<8x128xf32>
    %452 = tpu.matmul %380, %451, %cst_179 {dimension_numbers = #tpu.dot_dimension_numbers<[1], [0], [0], [1], [0, 0, 1, 1], [], []>} : vector<8x32xf32>, vector<32x128xf32>, vector<8x128xf32> -> vector<8x128xf32>
    %c104_180 = arith.constant 104 : index
    %c0_181 = arith.constant 0 : index
    %453 = vector.load %arg1[%c104_180, %c0_181] : memref<216x128xf32, #tpu.memory_space<vmem>>, vector<32x128xf32>
    %cst_182 = arith.constant dense<0.000000e+00> : vector<8x128xf32>
    %454 = tpu.matmul %403, %453, %cst_182 {dimension_numbers = #tpu.dot_dimension_numbers<[1], [0], [0], [1], [0, 0, 1, 1], [], []>} : vector<8x32xf32>, vector<32x128xf32>, vector<8x128xf32> -> vector<8x128xf32>
    %455 = arith.addf %452, %454 : vector<8x128xf32>
    %c136_183 = arith.constant 136 : index
    %c0_184 = arith.constant 0 : index
    %456 = vector.load %arg1[%c136_183, %c0_184] : memref<216x128xf32, #tpu.memory_space<vmem>>, vector<1x128xf32>
    %457 = vector.broadcast %456 : vector<1x128xf32> to vector<8x128xf32>
    %458 = arith.addf %455, %457 : vector<8x128xf32>
    %459 = arith.negf %458 : vector<8x128xf32>
    %460 = math.exp %459 : vector<8x128xf32>
    %cst_185 = arith.constant 1.000000e+00 : f32
    %461 = vector.broadcast %cst_185 : f32 to vector<8x128xf32>
    %462 = arith.addf %461, %460 : vector<8x128xf32>
    %463 = arith.divf %461, %462 : vector<8x128xf32>
    %464 = math.tanh %458 : vector<8x128xf32>
    %465 = vector.extract_strided_slice %463 {offsets = [0, 0], sizes = [8, 32], strides = [1, 1]} : vector<8x128xf32> to vector<8x32xf32>
    %466 = vector.extract_strided_slice %463 {offsets = [0, 32], sizes = [8, 32], strides = [1, 1]} : vector<8x128xf32> to vector<8x32xf32>
    %467 = vector.extract_strided_slice %463 {offsets = [0, 96], sizes = [8, 32], strides = [1, 1]} : vector<8x128xf32> to vector<8x32xf32>
    %468 = vector.extract_strided_slice %464 {offsets = [0, 64], sizes = [8, 32], strides = [1, 1]} : vector<8x128xf32> to vector<8x32xf32>
    %469 = arith.mulf %466, %401 : vector<8x32xf32>
    %470 = arith.mulf %465, %468 : vector<8x32xf32>
    %471 = arith.addf %469, %470 : vector<8x32xf32>
    %472 = math.tanh %471 : vector<8x32xf32>
    %473 = arith.mulf %467, %472 : vector<8x32xf32>
    %c144_186 = arith.constant 144 : index
    %c0_187 = arith.constant 0 : index
    %474 = vector.load %arg1[%c144_186, %c0_187] : memref<216x128xf32, #tpu.memory_space<vmem>>, vector<32x128xf32>
    %cst_188 = arith.constant dense<0.000000e+00> : vector<8x128xf32>
    %475 = tpu.matmul %403, %474, %cst_188 {dimension_numbers = #tpu.dot_dimension_numbers<[1], [0], [0], [1], [0, 0, 1, 1], [], []>} : vector<8x32xf32>, vector<32x128xf32>, vector<8x128xf32> -> vector<8x128xf32>
    %c176_189 = arith.constant 176 : index
    %c0_190 = arith.constant 0 : index
    %476 = vector.load %arg1[%c176_189, %c0_190] : memref<216x128xf32, #tpu.memory_space<vmem>>, vector<32x128xf32>
    %cst_191 = arith.constant dense<0.000000e+00> : vector<8x128xf32>
    %477 = tpu.matmul %426, %476, %cst_191 {dimension_numbers = #tpu.dot_dimension_numbers<[1], [0], [0], [1], [0, 0, 1, 1], [], []>} : vector<8x32xf32>, vector<32x128xf32>, vector<8x128xf32> -> vector<8x128xf32>
    %478 = arith.addf %475, %477 : vector<8x128xf32>
    %c208_192 = arith.constant 208 : index
    %c0_193 = arith.constant 0 : index
    %479 = vector.load %arg1[%c208_192, %c0_193] : memref<216x128xf32, #tpu.memory_space<vmem>>, vector<1x128xf32>
    %480 = vector.broadcast %479 : vector<1x128xf32> to vector<8x128xf32>
    %481 = arith.addf %478, %480 : vector<8x128xf32>
    %482 = arith.negf %481 : vector<8x128xf32>
    %483 = math.exp %482 : vector<8x128xf32>
    %cst_194 = arith.constant 1.000000e+00 : f32
    %484 = vector.broadcast %cst_194 : f32 to vector<8x128xf32>
    %485 = arith.addf %484, %483 : vector<8x128xf32>
    %486 = arith.divf %484, %485 : vector<8x128xf32>
    %487 = math.tanh %481 : vector<8x128xf32>
    %488 = vector.extract_strided_slice %486 {offsets = [0, 0], sizes = [8, 32], strides = [1, 1]} : vector<8x128xf32> to vector<8x32xf32>
    %489 = vector.extract_strided_slice %486 {offsets = [0, 32], sizes = [8, 32], strides = [1, 1]} : vector<8x128xf32> to vector<8x32xf32>
    %490 = vector.extract_strided_slice %486 {offsets = [0, 96], sizes = [8, 32], strides = [1, 1]} : vector<8x128xf32> to vector<8x32xf32>
    %491 = vector.extract_strided_slice %487 {offsets = [0, 64], sizes = [8, 32], strides = [1, 1]} : vector<8x128xf32> to vector<8x32xf32>
    %492 = arith.mulf %489, %424 : vector<8x32xf32>
    %493 = arith.mulf %488, %491 : vector<8x32xf32>
    %494 = arith.addf %492, %493 : vector<8x32xf32>
    %495 = math.tanh %494 : vector<8x32xf32>
    %496 = arith.mulf %490, %495 : vector<8x32xf32>
    %c72_195 = arith.constant 72 : index
    %c0_196 = arith.constant 0 : index
    %497 = vector.load %arg1[%c72_195, %c0_196] : memref<216x128xf32, #tpu.memory_space<vmem>>, vector<32x128xf32>
    %cst_197 = arith.constant dense<0.000000e+00> : vector<8x128xf32>
    %498 = tpu.matmul %450, %497, %cst_197 {dimension_numbers = #tpu.dot_dimension_numbers<[1], [0], [0], [1], [0, 0, 1, 1], [], []>} : vector<8x32xf32>, vector<32x128xf32>, vector<8x128xf32> -> vector<8x128xf32>
    %c104_198 = arith.constant 104 : index
    %c0_199 = arith.constant 0 : index
    %499 = vector.load %arg1[%c104_198, %c0_199] : memref<216x128xf32, #tpu.memory_space<vmem>>, vector<32x128xf32>
    %cst_200 = arith.constant dense<0.000000e+00> : vector<8x128xf32>
    %500 = tpu.matmul %473, %499, %cst_200 {dimension_numbers = #tpu.dot_dimension_numbers<[1], [0], [0], [1], [0, 0, 1, 1], [], []>} : vector<8x32xf32>, vector<32x128xf32>, vector<8x128xf32> -> vector<8x128xf32>
    %501 = arith.addf %498, %500 : vector<8x128xf32>
    %c136_201 = arith.constant 136 : index
    %c0_202 = arith.constant 0 : index
    %502 = vector.load %arg1[%c136_201, %c0_202] : memref<216x128xf32, #tpu.memory_space<vmem>>, vector<1x128xf32>
    %503 = vector.broadcast %502 : vector<1x128xf32> to vector<8x128xf32>
    %504 = arith.addf %501, %503 : vector<8x128xf32>
    %505 = arith.negf %504 : vector<8x128xf32>
    %506 = math.exp %505 : vector<8x128xf32>
    %cst_203 = arith.constant 1.000000e+00 : f32
    %507 = vector.broadcast %cst_203 : f32 to vector<8x128xf32>
    %508 = arith.addf %507, %506 : vector<8x128xf32>
    %509 = arith.divf %507, %508 : vector<8x128xf32>
    %510 = math.tanh %504 : vector<8x128xf32>
    %511 = vector.extract_strided_slice %509 {offsets = [0, 0], sizes = [8, 32], strides = [1, 1]} : vector<8x128xf32> to vector<8x32xf32>
    %512 = vector.extract_strided_slice %509 {offsets = [0, 32], sizes = [8, 32], strides = [1, 1]} : vector<8x128xf32> to vector<8x32xf32>
    %513 = vector.extract_strided_slice %509 {offsets = [0, 96], sizes = [8, 32], strides = [1, 1]} : vector<8x128xf32> to vector<8x32xf32>
    %514 = vector.extract_strided_slice %510 {offsets = [0, 64], sizes = [8, 32], strides = [1, 1]} : vector<8x128xf32> to vector<8x32xf32>
    %515 = arith.mulf %512, %471 : vector<8x32xf32>
    %516 = arith.mulf %511, %514 : vector<8x32xf32>
    %517 = arith.addf %515, %516 : vector<8x32xf32>
    %518 = math.tanh %517 : vector<8x32xf32>
    %519 = arith.mulf %513, %518 : vector<8x32xf32>
    %c144_204 = arith.constant 144 : index
    %c0_205 = arith.constant 0 : index
    %520 = vector.load %arg1[%c144_204, %c0_205] : memref<216x128xf32, #tpu.memory_space<vmem>>, vector<32x128xf32>
    %cst_206 = arith.constant dense<0.000000e+00> : vector<8x128xf32>
    %521 = tpu.matmul %473, %520, %cst_206 {dimension_numbers = #tpu.dot_dimension_numbers<[1], [0], [0], [1], [0, 0, 1, 1], [], []>} : vector<8x32xf32>, vector<32x128xf32>, vector<8x128xf32> -> vector<8x128xf32>
    %c176_207 = arith.constant 176 : index
    %c0_208 = arith.constant 0 : index
    %522 = vector.load %arg1[%c176_207, %c0_208] : memref<216x128xf32, #tpu.memory_space<vmem>>, vector<32x128xf32>
    %cst_209 = arith.constant dense<0.000000e+00> : vector<8x128xf32>
    %523 = tpu.matmul %496, %522, %cst_209 {dimension_numbers = #tpu.dot_dimension_numbers<[1], [0], [0], [1], [0, 0, 1, 1], [], []>} : vector<8x32xf32>, vector<32x128xf32>, vector<8x128xf32> -> vector<8x128xf32>
    %524 = arith.addf %521, %523 : vector<8x128xf32>
    %c208_210 = arith.constant 208 : index
    %c0_211 = arith.constant 0 : index
    %525 = vector.load %arg1[%c208_210, %c0_211] : memref<216x128xf32, #tpu.memory_space<vmem>>, vector<1x128xf32>
    %526 = vector.broadcast %525 : vector<1x128xf32> to vector<8x128xf32>
    %527 = arith.addf %524, %526 : vector<8x128xf32>
    %528 = arith.negf %527 : vector<8x128xf32>
    %529 = math.exp %528 : vector<8x128xf32>
    %cst_212 = arith.constant 1.000000e+00 : f32
    %530 = vector.broadcast %cst_212 : f32 to vector<8x128xf32>
    %531 = arith.addf %530, %529 : vector<8x128xf32>
    %532 = arith.divf %530, %531 : vector<8x128xf32>
    %533 = math.tanh %527 : vector<8x128xf32>
    %534 = vector.extract_strided_slice %532 {offsets = [0, 0], sizes = [8, 32], strides = [1, 1]} : vector<8x128xf32> to vector<8x32xf32>
    %535 = vector.extract_strided_slice %532 {offsets = [0, 32], sizes = [8, 32], strides = [1, 1]} : vector<8x128xf32> to vector<8x32xf32>
    %536 = vector.extract_strided_slice %532 {offsets = [0, 96], sizes = [8, 32], strides = [1, 1]} : vector<8x128xf32> to vector<8x32xf32>
    %537 = vector.extract_strided_slice %533 {offsets = [0, 64], sizes = [8, 32], strides = [1, 1]} : vector<8x128xf32> to vector<8x32xf32>
    %538 = arith.mulf %535, %494 : vector<8x32xf32>
    %539 = arith.mulf %534, %537 : vector<8x32xf32>
    %540 = arith.addf %538, %539 : vector<8x32xf32>
    %541 = math.tanh %540 : vector<8x32xf32>
    %542 = arith.mulf %536, %541 : vector<8x32xf32>
    %c144_213 = arith.constant 144 : index
    %c0_214 = arith.constant 0 : index
    %543 = vector.load %arg1[%c144_213, %c0_214] : memref<216x128xf32, #tpu.memory_space<vmem>>, vector<32x128xf32>
    %cst_215 = arith.constant dense<0.000000e+00> : vector<8x128xf32>
    %544 = tpu.matmul %519, %543, %cst_215 {dimension_numbers = #tpu.dot_dimension_numbers<[1], [0], [0], [1], [0, 0, 1, 1], [], []>} : vector<8x32xf32>, vector<32x128xf32>, vector<8x128xf32> -> vector<8x128xf32>
    %c176_216 = arith.constant 176 : index
    %c0_217 = arith.constant 0 : index
    %545 = vector.load %arg1[%c176_216, %c0_217] : memref<216x128xf32, #tpu.memory_space<vmem>>, vector<32x128xf32>
    %cst_218 = arith.constant dense<0.000000e+00> : vector<8x128xf32>
    %546 = tpu.matmul %542, %545, %cst_218 {dimension_numbers = #tpu.dot_dimension_numbers<[1], [0], [0], [1], [0, 0, 1, 1], [], []>} : vector<8x32xf32>, vector<32x128xf32>, vector<8x128xf32> -> vector<8x128xf32>
    %547 = arith.addf %544, %546 : vector<8x128xf32>
    %c208_219 = arith.constant 208 : index
    %c0_220 = arith.constant 0 : index
    %548 = vector.load %arg1[%c208_219, %c0_220] : memref<216x128xf32, #tpu.memory_space<vmem>>, vector<1x128xf32>
    %549 = vector.broadcast %548 : vector<1x128xf32> to vector<8x128xf32>
    %550 = arith.addf %547, %549 : vector<8x128xf32>
    %551 = arith.negf %550 : vector<8x128xf32>
    %552 = math.exp %551 : vector<8x128xf32>
    %cst_221 = arith.constant 1.000000e+00 : f32
    %553 = vector.broadcast %cst_221 : f32 to vector<8x128xf32>
    %554 = arith.addf %553, %552 : vector<8x128xf32>
    %555 = arith.divf %553, %554 : vector<8x128xf32>
    %556 = math.tanh %550 : vector<8x128xf32>
    %557 = vector.extract_strided_slice %555 {offsets = [0, 0], sizes = [8, 32], strides = [1, 1]} : vector<8x128xf32> to vector<8x32xf32>
    %558 = vector.extract_strided_slice %555 {offsets = [0, 32], sizes = [8, 32], strides = [1, 1]} : vector<8x128xf32> to vector<8x32xf32>
    %559 = vector.extract_strided_slice %555 {offsets = [0, 96], sizes = [8, 32], strides = [1, 1]} : vector<8x128xf32> to vector<8x32xf32>
    %560 = vector.extract_strided_slice %556 {offsets = [0, 64], sizes = [8, 32], strides = [1, 1]} : vector<8x128xf32> to vector<8x32xf32>
    %561 = arith.mulf %558, %540 : vector<8x32xf32>
    %562 = arith.mulf %557, %560 : vector<8x32xf32>
    %563 = arith.addf %561, %562 : vector<8x32xf32>
    %564 = math.tanh %563 : vector<8x32xf32>
    %565 = arith.mulf %559, %564 : vector<8x32xf32>
    %cst_222 = arith.constant dense<0.000000e+00> : vector<8xf32>
    %566 = vector.multi_reduction <add>, %565, %cst_222 [1] : vector<8x32xf32> to vector<8xf32>
    %567 = vector.shape_cast %566 : vector<8xf32> to vector<8x1xf32>
    %cst_223 = arith.constant 3.200000e+01 : f32
    %568 = vector.broadcast %cst_223 : f32 to vector<8x1xf32>
    %569 = arith.divf %567, %568 : vector<8x1xf32>
    %570 = vector.broadcast %569 : vector<8x1xf32> to vector<8x32xf32>
    %571 = arith.subf %565, %570 : vector<8x32xf32>
    %572 = arith.mulf %571, %571 : vector<8x32xf32>
    %cst_224 = arith.constant dense<0.000000e+00> : vector<8xf32>
    %573 = vector.multi_reduction <add>, %572, %cst_224 [1] : vector<8x32xf32> to vector<8xf32>
    %574 = vector.shape_cast %573 : vector<8xf32> to vector<8x1xf32>
    %cst_225 = arith.constant 3.200000e+01 : f32
    %575 = vector.broadcast %cst_225 : f32 to vector<8x1xf32>
    %576 = arith.divf %574, %575 : vector<8x1xf32>
    %577 = vector.broadcast %569 : vector<8x1xf32> to vector<8x32xf32>
    %578 = arith.subf %565, %577 : vector<8x32xf32>
    %cst_226 = arith.constant 9.99999974E-6 : f32
    %579 = vector.broadcast %cst_226 : f32 to vector<8x1xf32>
    %580 = arith.addf %576, %579 : vector<8x1xf32>
    %581 = math.rsqrt %580 : vector<8x1xf32>
    %582 = vector.broadcast %581 : vector<8x1xf32> to vector<8x32xf32>
    %583 = arith.mulf %578, %582 : vector<8x32xf32>
    %c0_227 = arith.constant 0 : index
    %c0_228 = arith.constant 0 : index
    %584 = vector.load %arg2[%c0_227, %c0_228] : memref<2x32xf32, #tpu.memory_space<vmem>>, vector<1x32xf32>
    %585 = vector.broadcast %584 : vector<1x32xf32> to vector<8x32xf32>
    %586 = arith.mulf %583, %585 : vector<8x32xf32>
    %c1 = arith.constant 1 : index
    %c0_229 = arith.constant 0 : index
    %587 = vector.load %arg2[%c1, %c0_229] : memref<2x32xf32, #tpu.memory_space<vmem>>, vector<1x32xf32>
    %588 = vector.broadcast %587 : vector<1x32xf32> to vector<8x32xf32>
    %589 = arith.addf %586, %588 : vector<8x32xf32>
    %c0_230 = arith.constant 0 : index
    %c0_231 = arith.constant 0 : index
    %590 = vector.load %arg3[%c0_230, %c0_231] : memref<33x1xf32, #tpu.memory_space<vmem>>, vector<32x1xf32>
    %cst_232 = arith.constant dense<0.000000e+00> : vector<8x1xf32>
    %591 = tpu.matmul %589, %590, %cst_232 {dimension_numbers = #tpu.dot_dimension_numbers<[1], [0], [0], [1], [0, 0, 1, 1], [], []>} : vector<8x32xf32>, vector<32x1xf32>, vector<8x1xf32> -> vector<8x1xf32>
    %c32_233 = arith.constant 32 : index
    %c0_234 = arith.constant 0 : index
    %592 = vector.load %arg3[%c32_233, %c0_234] : memref<33x1xf32, #tpu.memory_space<vmem>>, vector<1x1xf32>
    %593 = vector.broadcast %592 : vector<1x1xf32> to vector<8x1xf32>
    %594 = arith.addf %591, %593 : vector<8x1xf32>
    %c0_235 = arith.constant 0 : index
    %c0_236 = arith.constant 0 : index
    %595 = vector.load %arg4[%c0_235, %c0_236] : memref<8x1xf32, #tpu.memory_space<vmem>>, vector<8x1xf32>
    tpu.vector_store %arg4[%c0_235, %c0_236], %594 {strides = array<i32>} : memref<8x1xf32, #tpu.memory_space<vmem>>, vector<8x1xf32>,
    return
  }
}

</mosaic_0001>

<bundles_post_ra>
// kernel: tpu_custom_call.1
= control target key start
LH: loop header
LB: loop body
LE: loop exit
PB: predicated region body
PF: predicated region fallthrough
CT: control target
= control target key end

     0   :  { %9 = vsyncpa [#allocation3], 0  ;;  %s5698_s15 = smov [#allocation2]   ;;  %s6373_s0 = inlined_call_operand.vmem [shape: f32[64,32], index: 0, kind: input, shape index: {}]   ;;  %s6374_s1 = inlined_call_operand.hbm [shape: f32[216,128], index: 1, kind: input, shape index: {}]   ;;  %s6375_s2 = inlined_call_operand.vmem [shape: f32[2,32], index: 2, kind: input, shape index: {}]   ;;  %s6376_s3 = inlined_call_operand.vmem [shape: f32[33,1], index: 3, kind: input, shape index: {}]   ;;  %s6377_s4 = inlined_call_operand.vmem [shape: f32[8,1], index: 4, kind: output, shape index: {}]  }
   0x1   :  { %s17_s16 = sshll.u32 %s5698_s15, 4  ;;  %s5674_s19 = scalar_lea.hbm %s6374_s1, 3456  ;;  %s18_s16 = int_to_ptr.vmem [resolvable:$true] %s17_s16 }
   0x2   :  { %p5675_p0 = scmp.ne.s32.totalorder %s6374_s1, %s5674_s19  ;;  %p5678_p1 = scmp.lt.u32.totalorder %s5674_s19, %s6374_s1 }
   0x4   :  { %p5680_p2 = pnand %p5678_p1, %p5675_p0 }
   0x6   :  { %5683 = shalt.err (!%p5680_p2)
}
   0x7   :  { %s5684_s24 = scalar_lea.vmem %s18_s16, 3456  ;;  %p5689_p4 = scmp.lt.s32.totalorder %s18_s16, %s18_s16 }
   0x8   :  { %p5685_p3 = scmp.ne.s32.totalorder %s18_s16, %s5684_s24  ;;  %p5690_p5 = scmp.lt.s32.totalorder %s5684_s24, %s5684_s24 }
   0xa   :  { %p5691_p6 = por %p5690_p5, %p5689_p4 }
   0xc   :  { %p5692_p7 = pnand %p5691_p6, %p5685_p3 }
   0xe   :  { %5695 = shalt.err (!%p5692_p7)
}
   0xf   :  { %s5699_s25 = smov 128   ;;  %s5700_s26 = smov 8  }
  0x10   :  { %23 = dma.hbm_to_vmem [thread:$0]  %s6374_s1, 3456, %s18_s16, [#allocation3], %s5699_s25, %s5699_s25, %s5700_s26  }
  0x11   :  { %5696 = dma.done.wait [#allocation3], 3456  }
  0x12   :  { %5697 = vsyncadd [#allocation3], 4294963840  ;;  %v5701_v0 = vmov 0.0|0.0   ;;  %vm5702_vm0 = vmmov 0   ;;  %v5703_v1 = vmov 0.0   ;;  %v36_v2 = vld [vmem:[#allocation2 + $0x20] sm:$0xff] }
  0x13   :  { %5174 = vmatprep.subr.bf16.mxu0 %v5701_v0  ;;  %5180 = vmatprep.subr.bf16.mxu1 %v5701_v0  ;;  %v37_v3 = vld [vmem:[#allocation2 + $0x28] sm:$0xff]  ;;  %v32_v4 = vld [vmem:[#allocation2] sm:$0xff]  ;;  %v38_v7 = vld [vmem:[#allocation2 + $0x30] sm:$0xff]  ;;  %vm40_vm1 = vcmask 261120   ;;  %s5704_s30 = smov 64   ;;  %s5705_s5 = smov 32  }
  0x14   :  { %4643 = vmatprep.mubr.msk.f32.mxu0 %vm5702_vm0, %v5703_v1  ;;  %4654 = vmatprep.mubr.msk.f32.mxu1 %vm5702_vm0, %v5703_v1  ;;  %v5750_v5 = vpack.c.bf16 %v37_v3, %v36_v2  ;;  %v33_v6 = vld [vmem:[#allocation2 + $0x8] sm:$0xff]  ;;  %v39_v8 = vld [vmem:[#allocation2 + $0x38] sm:$0xff]  ;;  %v34_v10 = vld [vmem:[#allocation2 + $0x10] sm:$0xff]  ;;  %s5706_s21 = smov 96   ;;  %vm4307_vm2 = vcmask 7168  }
  0x15   :  { %v5752_v9 = vpack.c.bf16 %v33_v6, %v32_v4  ;;  %v35_v11 = vld [vmem:[#allocation2 + $0x18] sm:$0xff]  ;;  %v5755_v12 = vpack.c.bf16 %v39_v8, %v38_v7  ;;  %v31_v14 = vld [vmem:[%s6373_s0] sm:$0xff]  ;;  %v217_v32 = vld [vmem:[%s6373_s0 + $0x8] sm:$0xff] }
  0x16   :  { %5176 = vmatpush3.bf16.msra.mxu0 %v5750_v5  ;;  %v5759_v13 = vpack.c.bf16 %v35_v11, %v34_v10  ;;  %v5783_v17 = vld [vmem:[#allocation2 + $0x40] ss:$0 sm:$0xff]  ;;  %v391_v33 = vld [vmem:[#allocation2 + $0x48] sm:$0xff]  ;;  %v392_v34 = vld [vmem:[#allocation2 + $0x50] sm:$0xff] }
  0x17   :  { %5182 = vmatpush3.bf16.msra.mxu1 %v5752_v9  ;;  %5177 = vmatprep.subr.bf16.mxu0 %v5701_v0  ;;  %v5795_v35 = vpack.c.bf16 %v392_v34, %v391_v33  ;;  %v393_v36 = vld [vmem:[#allocation2 + $0x58] sm:$0xff]  ;;  %v394_v37 = vld [vmem:[#allocation2 + $0x60] sm:$0xff]  ;;  %v395_v44 = vld [vmem:[#allocation2 + $0x68] sm:$0xff] }
  0x18   :  { %5183 = vmatprep.subr.bf16.mxu1 %v5701_v0  ;;  %v5800_v38 = vpack.c.bf16 %v394_v37, %v393_v36  ;;  %v396_v45 = vld [vmem:[#allocation2 + $0x70] sm:$0xff]  ;;  %v397_v47 = vld [vmem:[#allocation2 + $0x78] sm:$0xff]  ;;  %v398_v48 = vld [vmem:[#allocation2 + $0x80] sm:$0xff] }
  0x19   :  { %v5807_v46 = vpack.c.bf16 %v396_v45, %v395_v44  ;;  %v5812_v50 = vpack.c.bf16 %v398_v48, %v397_v47  ;;  %v5833_v58 = vld [vmem:[#allocation2 + $0x88] ss:$0 sm:$0xff]  ;;  %v913_v34 = vld [vmem:[#allocation2 + $0x90] sm:$0xff]  ;;  %v914_v36 = vld [vmem:[#allocation2 + $0x98] sm:$0xff] }
  0x1a   :  { %5179 = vmatpush3.bf16.msra.mxu0 %v5755_v12  ;;  %v5861_v37 = vpack.c.bf16 %v914_v36, %v913_v34  ;;  %v918_v44 = vld [vmem:[#allocation2 + $0xb8] sm:$0xff]  ;;  %v919_v47 = vld [vmem:[#allocation2 + $0xc0] sm:$0xff]  ;;  %v920_v48 = vld [vmem:[#allocation2 + $0xc8] sm:$0xff] }
  0x1b   :  { %5185 = vmatpush3.bf16.msra.mxu1 %v5759_v13  ;;  %5186 = vmatprep.subr.bf16.mxu0 %v5701_v0 }
  0x1c   :  { %5192 = vmatprep.subr.bf16.mxu1 %v5701_v0 }
  0x1d   :  { %4644 = vmatmul.mubr.f32.vlgmr.msra.gmra.mrb[0].mxu0 %v5703_v1 }
  0x1e   :  { %4655 = vmatmul.mubr.msk.f32.vlgmr.msra.gmra.mrb[0].mxu1 %vm40_vm1, %v31_v14  ;;  %5188 = vmatpush3.bf16.msra.mxu0 %v5750_v5 }
  0x1f   :  { %5194 = vmatpush3.bf16.msra.mxu1 %v5752_v9  ;;  %4676 = vmatprep.mubr.msk.f32.mxu1 %vm5702_vm0, %v5703_v1 }
  0x20   :  { %5195 = vmatprep.subr.bf16.mxu1 %v5701_v0  ;;  %5189 = vmatprep.subr.bf16.mxu0 %v5701_v0 }
  0x21   :  { %4665 = vmatprep.mubr.msk.f32.mxu0 %vm5702_vm0, %v5703_v1 }
  0x22   :  { %5191 = vmatpush3.bf16.msra.mxu0 %v5755_v12 }
  0x23   :  { %5197 = vmatpush3.bf16.msra.mxu1 %v5759_v13  ;;  %5198 = vmatprep.subr.bf16.mxu0 %v5701_v0 }
  0x24   :  { %5204 = vmatprep.subr.bf16.mxu1 %v5701_v0 }
  0x26   :  { %4677 = vmatmul.mubr.msk.f32.vlgmr.msra.gmra.mrb[2].mxu1 %vm40_vm1, %v217_v32 }
  0x27   :  { %4698 = vmatprep.mubr.msk.f32.mxu1 %vm5702_vm0, %v5703_v1  ;;  %5206 = vmatpush3.bf16.msra.mxu1 %v5795_v35 }
  0x28   :  { %5207 = vmatprep.subr.bf16.mxu1 %v5701_v0 }
  0x2b   :  { %5209 = vmatpush3.bf16.msra.mxu1 %v5800_v38 }
  0x2c   :  { %5216 = vmatprep.subr.bf16.mxu1 %v5701_v0 }
  0xf0   :  { %v110_v15 = vpop.f32.mrb[0].mxu0 }
  0xf1   :  { %v183_v16 = vpop.f32.mrb[0].mxu1  ;;  %v4645_v18 = vpop.f32.mrb[1].mxu0 }
  0xf2   :  { %v184_v19 = vadd.f32 %v183_v16, %v110_v15  ;;  %v4656_v20 = vpop.f32.mrb[1].mxu1 }
  0xf4   :  { %v192_v21 = vadd.f32 %v5783_v17, %v184_v19 }
  0xf6   :  { %5477 = vtanh.f32 %v192_v21  ;;  %v4316_v23 = vmul.f32 -1.442695, %v192_v21 }
  0xf8   :  { %5479 = vpow2.f32 %v4316_v23 }
  0xf9   :  { %v362_v42 = vpop.f32.mrb[2].mxu1 }
  0xfa   :  { %v4678_v43 = vpop.f32.mrb[3].mxu1 }
  0xfb   :  { %v917_v43 = vld [vmem:[#allocation2 + $0xb0] sm:$0xff] }
  0xfc   :  { %v5877_v45 = vpack.c.bf16 %v918_v44, %v917_v43 }
 0x100   :  { %v5478_v22 = vpop.eup %5477 }
 0x101   :  { %202 = vrot.lane.b32.xlu0 %v5478_v22, %s5704_s30 }
 0x102   :  { %v5480_v24 = vpop.eup %5479 }
 0x103   :  { %v196_v25 = vadd.f32 1.0, %v5480_v24 }
 0x105   :  { %5481 = vrcp.f32 %v196_v25  ;;  %v569_v25 = vld [vmem:[%s6373_s0 + $0x10] sm:$0xff] }
 0x10f   :  { %v5482_v26 = vpop.eup %5481 }
 0x110   :  { %v200_v29 = vmul.f32 0.0, %v5482_v26 }
 0x173   :  { %v203_v27 = vpop.permute.xlu0 %202 }
 0x174   :  { %v205_v28 = vmul.f32 %v5482_v26, %v203_v27 }
 0x176   :  { %207 = vrot.lane.b32.xlu0 %v205_v28, %s5705_s5 }
 0x1e8   :  { %v208_v30 = vpop.permute.xlu0 %207 }
 0x1e9   :  { %v5788_v31 = vadd.f32 %v208_v30, %v200_v29 }
 0x1eb   :  { %5483 = vtanh.f32 %v5788_v31 }
 0x1f5   :  { %v5484_v39 = vpop.eup %5483 }
 0x1f6   :  { %213 = vrot.lane.b32.xlu1 %v5484_v39, %s5704_s30  ;;  %v915_v39 = vld [vmem:[#allocation2 + $0xa0] sm:$0xff] }
 0x268   :  { %v214_v40 = vpop.permute.xlu1 %213 }
 0x269   :  { %v216_v41 = vmul.f32 %v5482_v26, %v214_v40  ;;  %v916_v40 = vld [vmem:[#allocation2 + $0xa8] sm:$0xff] }
 0x26b   :  { %219 = vrot.lane.b32.xlu1 %v216_v41, %s5705_s5 }
 0x2dd   :  { %v220_v49 = vpop.permute.xlu1 %219 }
 0x2de   :  { %4666 = vmatmul.mubr.msk.f32.vlgmr.msra.gmra.mrb[2].mxu0 %vm40_vm1, %v220_v49  ;;  %4699 = vmatmul.mubr.msk.f32.vlgmr.msra.gmra.mrb[4].mxu1 %vm40_vm1, %v220_v49 }
 0x2df   :  { %5200 = vmatpush3.bf16.msra.mxu0 %v5807_v46  ;;  %4687 = vmatprep.mubr.msk.f32.mxu0 %vm5702_vm0, %v5703_v1 }
 0x2e0   :  { %5201 = vmatprep.subr.bf16.mxu0 %v5701_v0  ;;  %5218 = vmatpush3.bf16.msra.mxu1 %v5752_v9 }
 0x2e1   :  { %5219 = vmatprep.subr.bf16.mxu1 %v5701_v0  ;;  %4720 = vmatprep.mubr.msk.f32.mxu1 %vm5702_vm0, %v5703_v1 }
 0x2e3   :  { %5203 = vmatpush3.bf16.msra.mxu0 %v5812_v50 }
 0x2e4   :  { %5221 = vmatpush3.bf16.msra.mxu1 %v5759_v13  ;;  %5210 = vmatprep.subr.bf16.mxu0 %v5701_v0 }
 0x2e5   :  { %5228 = vmatprep.subr.bf16.mxu1 %v5701_v0 }
 0x2e6   :  { %4688 = vmatmul.mubr.f32.vlgmr.msra.gmra.mrb[4].mxu0 %v5703_v1 }
 0x2e7   :  { %5212 = vmatpush3.bf16.msra.mxu0 %v5750_v5  ;;  %4709 = vmatprep.mubr.msk.f32.mxu0 %vm5702_vm0, %v5703_v1 }
 0x2e8   :  { %5213 = vmatprep.subr.bf16.mxu0 %v5701_v0  ;;  %4721 = vmatmul.mubr.msk.f32.vlgmr.msra.gmra.mrb[6].mxu1 %vm40_vm1, %v569_v25 }
 0x2e9   :  { %5230 = vmatpush3.bf16.msra.mxu1 %v5795_v35  ;;  %4742 = vmatprep.mubr.msk.f32.mxu1 %vm5702_vm0, %v5703_v1 }
 0x2ea   :  { %5231 = vmatprep.subr.bf16.mxu1 %v5701_v0 }
 0x2eb   :  { %5215 = vmatpush3.bf16.msra.mxu0 %v5755_v12 }
 0x2ec   :  { %5222 = vmatprep.subr.bf16.mxu0 %v5701_v0 }
 0x2ed   :  { %5233 = vmatpush3.bf16.msra.mxu1 %v5800_v38 }
 0x2ee   :  { %5240 = vmatprep.subr.bf16.mxu1 %v5701_v0 }
 0x3b1   :  { %v289_v51 = vpop.f32.mrb[2].mxu0  ;;  %v535_v52 = vpop.f32.mrb[4].mxu1 }
 0x3b2   :  { %v363_v53 = vadd.f32 %v362_v42, %v289_v51  ;;  %v4667_v54 = vpop.f32.mrb[3].mxu0  ;;  %v4700_v55 = vpop.f32.mrb[5].mxu1  ;;  %v5867_v42 = vpack.c.bf16 %v916_v40, %v915_v39  ;;  %v5884_v51 = vpack.c.bf16 %v920_v48, %v919_v47 }
 0x3b4   :  { %v366_v56 = vadd.f32 %v5783_v17, %v363_v53 }
 0x3b6   :  { %5485 = vtanh.f32 %v366_v56  ;;  %v4319_v2 = vmul.f32 -1.442695, %v366_v56 }
 0x3b9   :  { %v465_v57 = vpop.f32.mrb[4].mxu0 }
 0x3ba   :  { %v536_v59 = vadd.f32 %v535_v52, %v465_v57  ;;  %v4689_v60 = vpop.f32.mrb[5].mxu0 }
 0x3bb   :  { %v714_v32 = vpop.f32.mrb[6].mxu1 }
 0x3bc   :  { %v544_v61 = vadd.f32 %v5833_v58, %v536_v59  ;;  %v4722_v33 = vpop.f32.mrb[7].mxu1 }
 0x3be   :  { %5487 = vtanh.f32 %v544_v61  ;;  %v4322_v3 = vmul.f32 -1.442695, %v544_v61 }
 0x3bf   :  { %5489 = vpow2.f32 %v4319_v2 }
 0x3c0   :  { %v5486_v62 = vpop.eup %5485  ;;  %5491 = vpow2.f32 %v4322_v3 }
 0x3c1   :  { %376 = vrot.lane.b32.xlu0 %v5486_v62, %s5704_s30 }
 0x3c8   :  { %v5488_v63 = vpop.eup %5487 }
 0x3c9   :  { %554 = vrot.lane.b32.xlu1 %v5488_v63, %s5704_s30  ;;  %v5490_v4 = vpop.eup %5489 }
 0x3ca   :  { %v370_v6 = vadd.f32 1.0, %v5490_v4  ;;  %v5492_v7 = vpop.eup %5491 }
 0x3cb   :  { %v548_v8 = vadd.f32 1.0, %v5492_v7 }
 0x3cc   :  { %5493 = vrcp.f32 %v370_v6  ;;  %v5906_v6 = vld [vmem:[#allocation2 + $0xd0] ss:$0 sm:$0xff] }
 0x3cd   :  { %5495 = vrcp.f32 %v548_v8 }
 0x3d6   :  { %v5494_v10 = vpop.eup %5493 }
 0x3d7   :  { %v5496_v15 = vpop.eup %5495  ;;  %v374_v19 = vmul.f32 %v5494_v10, %v5788_v31 }
 0x3d8   :  { %v552_v22 = vmul.f32 0.0, %v5496_v15 }
 0x433   :  { %v377_v11 = vpop.permute.xlu0 %376 }
 0x434   :  { %v379_v14 = vmul.f32 %v5494_v10, %v377_v11 }
 0x436   :  { %381 = vrot.lane.b32.xlu0 %v379_v14, %s5705_s5 }
 0x43b   :  { %v555_v16 = vpop.permute.xlu1 %554 }
 0x43c   :  { %v557_v18 = vmul.f32 %v5496_v15, %v555_v16 }
 0x43e   :  { %559 = vrot.lane.b32.xlu1 %v557_v18, %s5705_s5 }
 0x4a8   :  { %v382_v20 = vpop.permute.xlu0 %381 }
 0x4a9   :  { %v5841_v21 = vadd.f32 %v382_v20, %v374_v19 }
 0x4ab   :  { %5497 = vtanh.f32 %v5841_v21 }
 0x4b0   :  { %v560_v23 = vpop.permute.xlu1 %559 }
 0x4b1   :  { %v5844_v24 = vadd.f32 %v560_v23, %v552_v22 }
 0x4b3   :  { %5499 = vtanh.f32 %v5844_v24 }
 0x4b5   :  { %v5498_v26 = vpop.eup %5497 }
 0x4b6   :  { %387 = vrot.lane.b32.xlu0 %v5498_v26, %s5704_s30 }
 0x4bd   :  { %v5500_v27 = vpop.eup %5499 }
 0x4be   :  { %565 = vrot.lane.b32.xlu1 %v5500_v27, %s5704_s30 }
 0x528   :  { %v388_v28 = vpop.permute.xlu0 %387 }
 0x529   :  { %v390_v29 = vmul.f32 %v5494_v10, %v388_v28 }
 0x52b   :  { %571 = vrot.lane.b32.xlu0 %v390_v29, %s5705_s5 }
 0x530   :  { %v566_v30 = vpop.permute.xlu1 %565 }
 0x531   :  { %v568_v31 = vmul.f32 %v5496_v15, %v566_v30 }
 0x533   :  { %744 = vrot.lane.b32.xlu1 %v568_v31, %s5705_s5 }
 0x59d   :  { %v572_v41 = vpop.permute.xlu0 %571 }
 0x59e   :  { %4710 = vmatmul.mubr.msk.f32.vlgmr.msra.gmra.mrb[6].mxu0 %vm40_vm1, %v572_v41  ;;  %4743 = vmatmul.mubr.msk.f32.vlgmr.msra.gmra.mrb[8].mxu1 %vm40_vm1, %v572_v41 }
 0x59f   :  { %5224 = vmatpush3.bf16.msra.mxu0 %v5807_v46  ;;  %5242 = vmatpush3.bf16.msra.mxu1 %v5861_v37 }
 0x5a0   :  { %5225 = vmatprep.subr.bf16.mxu0 %v5701_v0  ;;  %5243 = vmatprep.subr.bf16.mxu1 %v5701_v0 }
 0x5a1   :  { %4731 = vmatprep.mubr.msk.f32.mxu0 %vm5702_vm0, %v5703_v1  ;;  %4764 = vmatprep.mubr.msk.f32.mxu1 %vm5702_vm0, %v5703_v1 }
 0x5a3   :  { %5227 = vmatpush3.bf16.msra.mxu0 %v5812_v50  ;;  %5245 = vmatpush3.bf16.msra.mxu1 %v5867_v42 }
 0x5a4   :  { %5234 = vmatprep.subr.bf16.mxu0 %v5701_v0  ;;  %5252 = vmatprep.subr.bf16.mxu1 %v5701_v0 }
 0x5a5   :  { %v745_v49 = vpop.permute.xlu1 %744 }
 0x5a6   :  { %4732 = vmatmul.mubr.msk.f32.vlgmr.msra.gmra.mrb[8].mxu0 %vm40_vm1, %v745_v49  ;;  %4765 = vmatmul.mubr.msk.f32.vlgmr.msra.gmra.mrb[10].mxu1 %vm40_vm1, %v745_v49 }
 0x5a7   :  { %5236 = vmatpush3.bf16.msra.mxu0 %v5877_v45  ;;  %4753 = vmatprep.mubr.msk.f32.mxu0 %vm5702_vm0, %v5703_v1 }
 0x5a8   :  { %5237 = vmatprep.subr.bf16.mxu0 %v5701_v0  ;;  %5254 = vmatpush3.bf16.msra.mxu1 %v5752_v9 }
 0x5a9   :  { %5255 = vmatprep.subr.bf16.mxu1 %v5701_v0  ;;  %4786 = vmatprep.mubr.msk.f32.mxu1 %vm5702_vm0, %v5703_v1 }
 0x5ab   :  { %5239 = vmatpush3.bf16.msra.mxu0 %v5884_v51 }
 0x5ac   :  { %5257 = vmatpush3.bf16.msra.mxu1 %v5759_v13  ;;  %5246 = vmatprep.subr.bf16.mxu0 %v5701_v0 }
 0x5ad   :  { %5264 = vmatprep.subr.bf16.mxu1 %v5701_v0 }
 0x5ae   :  { %4754 = vmatmul.mubr.f32.vlgmr.msra.gmra.mrb[10].mxu0 %v5703_v1 }
 0x5af   :  { %5248 = vmatpush3.bf16.msra.mxu0 %v5750_v5  ;;  %4775 = vmatprep.mubr.msk.f32.mxu0 %vm5702_vm0, %v5703_v1 }
 0x5b0   :  { %5249 = vmatprep.subr.bf16.mxu0 %v5701_v0 }
 0x5b3   :  { %5251 = vmatpush3.bf16.msra.mxu0 %v5755_v12 }
 0x5b4   :  { %5258 = vmatprep.subr.bf16.mxu0 %v5701_v0 }
 0x671   :  { %v641_v52 = vpop.f32.mrb[6].mxu0  ;;  %v884_v53 = vpop.f32.mrb[8].mxu1 }
 0x672   :  { %v715_v54 = vadd.f32 %v714_v32, %v641_v52  ;;  %v4711_v55 = vpop.f32.mrb[7].mxu0  ;;  %v4744_v56 = vpop.f32.mrb[9].mxu1 }
 0x674   :  { %v718_v57 = vadd.f32 %v5783_v17, %v715_v54 }
 0x676   :  { %5501 = vtanh.f32 %v718_v57  ;;  %v4325_v15 = vmul.f32 -1.442695, %v718_v57 }
 0x679   :  { %v814_v59 = vpop.f32.mrb[8].mxu0  ;;  %v1057_v60 = vpop.f32.mrb[10].mxu1 }
 0x67a   :  { %v885_v61 = vadd.f32 %v884_v53, %v814_v59  ;;  %v4733_v62 = vpop.f32.mrb[9].mxu0  ;;  %v4766_v63 = vpop.f32.mrb[11].mxu1 }
 0x67c   :  { %v888_v2 = vadd.f32 %v5833_v58, %v885_v61 }
 0x67e   :  { %5503 = vtanh.f32 %v888_v2  ;;  %v4328_v16 = vmul.f32 -1.442695, %v888_v2 }
 0x680   :  { %v5502_v3 = vpop.eup %5501 }
 0x681   :  { %v987_v4 = vpop.f32.mrb[10].mxu0  ;;  %728 = vrot.lane.b32.xlu0 %v5502_v3, %s5704_s30 }
 0x682   :  { %v1058_v7 = vadd.f32 %v1057_v60, %v987_v4  ;;  %v4755_v8 = vpop.f32.mrb[11].mxu0 }
 0x684   :  { %v1066_v10 = vadd.f32 %v5906_v6, %v1058_v7 }
 0x686   :  { %5505 = vtanh.f32 %v1066_v10  ;;  %v4331_v19 = vmul.f32 -1.442695, %v1066_v10 }
 0x687   :  { %5507 = vpow2.f32 %v4325_v15 }
 0x688   :  { %v5504_v11 = vpop.eup %5503  ;;  %5509 = vpow2.f32 %v4328_v16 }
 0x689   :  { %898 = vrot.lane.b32.xlu1 %v5504_v11, %s5704_s30  ;;  %5511 = vpow2.f32 %v4331_v19 }
 0x690   :  { %v5506_v14 = vpop.eup %5505 }
 0x691   :  { %1076 = vrot.lane.b32.xlu0 %v5506_v14, %s5704_s30  ;;  %v5508_v18 = vpop.eup %5507 }
 0x692   :  { %v722_v20 = vadd.f32 1.0, %v5508_v18  ;;  %v5510_v22 = vpop.eup %5509 }
 0x693   :  { %v892_v23 = vadd.f32 1.0, %v5510_v22  ;;  %v5512_v25 = vpop.eup %5511 }
 0x694   :  { %5513 = vrcp.f32 %v722_v20  ;;  %v1070_v29 = vadd.f32 1.0, %v5512_v25 }
 0x695   :  { %5515 = vrcp.f32 %v892_v23 }
 0x696   :  { %5517 = vrcp.f32 %v1070_v29 }
 0x69e   :  { %v5514_v26 = vpop.eup %5513 }
 0x69f   :  { %v5516_v30 = vpop.eup %5515  ;;  %v726_v39 = vmul.f32 %v5514_v26, %v5841_v21  ;;  %v1091_v21 = vld [vmem:[%s6373_s0 + $0x18] sm:$0xff] }
 0x6a0   :  { %v5518_v33 = vpop.eup %5517  ;;  %v896_v43 = vmul.f32 %v5516_v30, %v5844_v24  ;;  %4787 = vmatmul.mubr.msk.f32.vlgmr.msra.gmra.mrb[12].mxu1 %vm40_vm1, %v1091_v21 }
 0x6a1   :  { %v1074_v49 = vmul.f32 0.0, %v5518_v33  ;;  %5266 = vmatpush3.bf16.msra.mxu1 %v5795_v35  ;;  %4808 = vmatprep.mubr.msk.f32.mxu1 %vm5702_vm0, %v5703_v1 }
 0x6a2   :  { %5267 = vmatprep.subr.bf16.mxu1 %v5701_v0 }
 0x6a5   :  { %5269 = vmatpush3.bf16.msra.mxu1 %v5800_v38 }
 0x6a6   :  { %5276 = vmatprep.subr.bf16.mxu1 %v5701_v0 }
 0x6f3   :  { %v729_v27 = vpop.permute.xlu0 %728 }
 0x6f4   :  { %v731_v28 = vmul.f32 %v5514_v26, %v729_v27 }
 0x6f6   :  { %733 = vrot.lane.b32.xlu1 %v731_v28, %s5705_s5 }
 0x6fb   :  { %v899_v31 = vpop.permute.xlu1 %898 }
 0x6fc   :  { %v901_v32 = vmul.f32 %v5516_v30, %v899_v31 }
 0x6fe   :  { %903 = vrot.lane.b32.xlu0 %v901_v32, %s5705_s5 }
 0x703   :  { %v1077_v34 = vpop.permute.xlu0 %1076 }
 0x704   :  { %v1079_v36 = vmul.f32 %v5518_v33, %v1077_v34 }
 0x706   :  { %1081 = vrot.lane.b32.xlu1 %v1079_v36, %s5705_s5 }
 0x768   :  { %v734_v40 = vpop.permute.xlu1 %733 }
 0x769   :  { %v5916_v41 = vadd.f32 %v734_v40, %v726_v39 }
 0x76b   :  { %5519 = vtanh.f32 %v5916_v41 }
 0x770   :  { %v904_v44 = vpop.permute.xlu0 %903 }
 0x771   :  { %v5920_v47 = vadd.f32 %v904_v44, %v896_v43 }
 0x773   :  { %5521 = vtanh.f32 %v5920_v47  ;;  %v1236_v62 = vpop.f32.mrb[12].mxu1 }
 0x774   :  { %v4788_v63 = vpop.f32.mrb[13].mxu1 }
 0x775   :  { %v5520_v48 = vpop.eup %5519 }
 0x776   :  { %739 = vrot.lane.b32.xlu0 %v5520_v48, %s5704_s30 }
 0x778   :  { %v1082_v52 = vpop.permute.xlu1 %1081 }
 0x779   :  { %v5924_v53 = vadd.f32 %v1082_v52, %v1074_v49 }
 0x77b   :  { %5523 = vtanh.f32 %v5924_v53 }
 0x77d   :  { %v5522_v24 = vpop.eup %5521 }
 0x77e   :  { %909 = vrot.lane.b32.xlu1 %v5522_v24, %s5704_s30 }
 0x785   :  { %v5524_v54 = vpop.eup %5523 }
 0x786   :  { %1087 = vrot.lane.b32.xlu0 %v5524_v54, %s5704_s30 }
 0x7e8   :  { %v740_v55 = vpop.permute.xlu0 %739 }
 0x7e9   :  { %v742_v56 = vmul.f32 %v5514_v26, %v740_v55 }
 0x7eb   :  { %1093 = vrot.lane.b32.xlu1 %v742_v56, %s5705_s5 }
 0x7f0   :  { %v910_v57 = vpop.permute.xlu1 %909 }
 0x7f1   :  { %v912_v59 = vmul.f32 %v5516_v30, %v910_v57 }
 0x7f3   :  { %1266 = vrot.lane.b32.xlu0 %v912_v59, %s5705_s5 }
 0x7f8   :  { %v1088_v60 = vpop.permute.xlu0 %1087 }
 0x7f9   :  { %v1090_v61 = vmul.f32 %v5518_v33, %v1088_v60 }
 0x7fb   :  { %1436 = vrot.lane.b32.xlu1 %v1090_v61, %s5705_s5 }
 0x85d   :  { %v1094_v2 = vpop.permute.xlu1 %1093 }
 0x85e   :  { %4776 = vmatmul.mubr.msk.f32.vlgmr.msra.gmra.mrb[12].mxu0 %vm40_vm1, %v1094_v2  ;;  %4809 = vmatmul.mubr.msk.f32.vlgmr.msra.gmra.mrb[14].mxu1 %vm40_vm1, %v1094_v2 }
 0x85f   :  { %5260 = vmatpush3.bf16.msra.mxu0 %v5807_v46  ;;  %5278 = vmatpush3.bf16.msra.mxu1 %v5861_v37 }
 0x860   :  { %5261 = vmatprep.subr.bf16.mxu0 %v5701_v0  ;;  %5279 = vmatprep.subr.bf16.mxu1 %v5701_v0 }
 0x861   :  { %4797 = vmatprep.mubr.msk.f32.mxu0 %vm5702_vm0, %v5703_v1  ;;  %4830 = vmatprep.mubr.msk.f32.mxu1 %vm5702_vm0, %v5703_v1 }
 0x863   :  { %5263 = vmatpush3.bf16.msra.mxu0 %v5812_v50  ;;  %5281 = vmatpush3.bf16.msra.mxu1 %v5867_v42 }
 0x864   :  { %5270 = vmatprep.subr.bf16.mxu0 %v5701_v0  ;;  %5288 = vmatprep.subr.bf16.mxu1 %v5701_v0 }
 0x865   :  { %v1267_v3 = vpop.permute.xlu0 %1266 }
 0x866   :  { %4798 = vmatmul.mubr.msk.f32.vlgmr.msra.gmra.mrb[14].mxu0 %vm40_vm1, %v1267_v3  ;;  %4831 = vmatmul.mubr.msk.f32.vlgmr.msra.gmra.mrb[16].mxu1 %vm40_vm1, %v1267_v3 }
 0x867   :  { %5272 = vmatpush3.bf16.msra.mxu0 %v5877_v45  ;;  %4819 = vmatprep.mubr.msk.f32.mxu0 %vm5702_vm0, %v5703_v1 }
 0x868   :  { %5273 = vmatprep.subr.bf16.mxu0 %v5701_v0  ;;  %5290 = vmatpush3.bf16.msra.mxu1 %v5752_v9 }
 0x869   :  { %5291 = vmatprep.subr.bf16.mxu1 %v5701_v0  ;;  %4852 = vmatprep.mubr.msk.f32.mxu1 %vm5702_vm0, %v5703_v1 }
 0x86b   :  { %5275 = vmatpush3.bf16.msra.mxu0 %v5884_v51 }
 0x86c   :  { %5293 = vmatpush3.bf16.msra.mxu1 %v5759_v13  ;;  %5282 = vmatprep.subr.bf16.mxu0 %v5701_v0 }
 0x86d   :  { %v1437_v4 = vpop.permute.xlu1 %1436  ;;  %5300 = vmatprep.subr.bf16.mxu1 %v5701_v0 }
 0x86e   :  { %4820 = vmatmul.mubr.msk.f32.vlgmr.msra.gmra.mrb[16].mxu0 %vm40_vm1, %v1437_v4 }
 0x86f   :  { %5284 = vmatpush3.bf16.msra.mxu0 %v5750_v5  ;;  %4841 = vmatprep.mubr.msk.f32.mxu0 %vm5702_vm0, %v5703_v1 }
 0x870   :  { %5285 = vmatprep.subr.bf16.mxu0 %v5701_v0 }
 0x873   :  { %5287 = vmatpush3.bf16.msra.mxu0 %v5755_v12 }
 0x874   :  { %5294 = vmatprep.subr.bf16.mxu0 %v5701_v0 }
 0x931   :  { %v1163_v7 = vpop.f32.mrb[12].mxu0  ;;  %v1406_v8 = vpop.f32.mrb[14].mxu1 }
 0x932   :  { %v1237_v10 = vadd.f32 %v1236_v62, %v1163_v7  ;;  %v4777_v11 = vpop.f32.mrb[13].mxu0  ;;  %v4810_v14 = vpop.f32.mrb[15].mxu1 }
 0x934   :  { %v1240_v15 = vadd.f32 %v5783_v17, %v1237_v10 }
 0x936   :  { %5525 = vtanh.f32 %v1240_v15  ;;  %v4334_v32 = vmul.f32 -1.442695, %v1240_v15 }
 0x939   :  { %v1336_v16 = vpop.f32.mrb[14].mxu0  ;;  %v1576_v18 = vpop.f32.mrb[16].mxu1 }
 0x93a   :  { %v1407_v19 = vadd.f32 %v1406_v8, %v1336_v16  ;;  %v4799_v20 = vpop.f32.mrb[15].mxu0  ;;  %v4832_v22 = vpop.f32.mrb[17].mxu1 }
 0x93c   :  { %v1410_v23 = vadd.f32 %v5833_v58, %v1407_v19 }
 0x93e   :  { %5527 = vtanh.f32 %v1410_v23  ;;  %v4337_v33 = vmul.f32 -1.442695, %v1410_v23 }
 0x940   :  { %v5526_v25 = vpop.eup %5525 }
 0x941   :  { %v1506_v26 = vpop.f32.mrb[16].mxu0  ;;  %1250 = vrot.lane.b32.xlu0 %v5526_v25, %s5704_s30 }
 0x942   :  { %v1577_v27 = vadd.f32 %v1576_v18, %v1506_v26  ;;  %v4821_v28 = vpop.f32.mrb[17].mxu0 }
 0x944   :  { %v1580_v29 = vadd.f32 %v5906_v6, %v1577_v27 }
 0x946   :  { %5529 = vtanh.f32 %v1580_v29  ;;  %v4340_v36 = vmul.f32 -1.442695, %v1580_v29 }
 0x947   :  { %5531 = vpow2.f32 %v4334_v32 }
 0x948   :  { %v5528_v30 = vpop.eup %5527  ;;  %5533 = vpow2.f32 %v4337_v33 }
 0x949   :  { %1420 = vrot.lane.b32.xlu1 %v5528_v30, %s5704_s30  ;;  %5535 = vpow2.f32 %v4340_v36 }
 0x950   :  { %v5530_v31 = vpop.eup %5529 }
 0x951   :  { %1590 = vrot.lane.b32.xlu0 %v5530_v31, %s5704_s30  ;;  %v5532_v34 = vpop.eup %5531 }
 0x952   :  { %v1244_v39 = vadd.f32 1.0, %v5532_v34  ;;  %v5534_v40 = vpop.eup %5533 }
 0x953   :  { %v1414_v43 = vadd.f32 1.0, %v5534_v40  ;;  %v5536_v44 = vpop.eup %5535 }
 0x954   :  { %5537 = vrcp.f32 %v1244_v39  ;;  %v1584_v21 = vadd.f32 1.0, %v5536_v44 }
 0x955   :  { %5539 = vrcp.f32 %v1414_v43 }
 0x956   :  { %5541 = vrcp.f32 %v1584_v21 }
 0x95e   :  { %v5538_v48 = vpop.eup %5537 }
 0x95f   :  { %v5540_v24 = vpop.eup %5539  ;;  %v1248_v60 = vmul.f32 %v5538_v48, %v5916_v41  ;;  %v1605_v41 = vld [vmem:[%s6373_s0 + $0x20] sm:$0xff] }
 0x960   :  { %v5542_v56 = vpop.eup %5541  ;;  %v1418_v63 = vmul.f32 %v5540_v24, %v5920_v47  ;;  %4853 = vmatmul.mubr.msk.f32.vlgmr.msra.gmra.mrb[18].mxu1 %vm40_vm1, %v1605_v41 }
 0x961   :  { %v1588_v7 = vmul.f32 %v5542_v56, %v5924_v53  ;;  %5302 = vmatpush3.bf16.msra.mxu1 %v5795_v35  ;;  %4874 = vmatprep.mubr.msk.f32.mxu1 %vm5702_vm0, %v5703_v1 }
 0x962   :  { %5303 = vmatprep.subr.bf16.mxu1 %v5701_v0 }
 0x965   :  { %5305 = vmatpush3.bf16.msra.mxu1 %v5800_v38 }
 0x966   :  { %5312 = vmatprep.subr.bf16.mxu1 %v5701_v0 }
 0x9b3   :  { %v1251_v49 = vpop.permute.xlu0 %1250 }
 0x9b4   :  { %v1253_v52 = vmul.f32 %v5538_v48, %v1251_v49 }
 0x9b6   :  { %1255 = vrot.lane.b32.xlu1 %v1253_v52, %s5705_s5 }
 0x9bb   :  { %v1421_v54 = vpop.permute.xlu1 %1420 }
 0x9bc   :  { %v1423_v55 = vmul.f32 %v5540_v24, %v1421_v54 }
 0x9be   :  { %1425 = vrot.lane.b32.xlu0 %v1423_v55, %s5705_s5 }
 0x9c3   :  { %v1591_v57 = vpop.permute.xlu0 %1590 }
 0x9c4   :  { %v1593_v59 = vmul.f32 %v5542_v56, %v1591_v57 }
 0x9c6   :  { %1595 = vrot.lane.b32.xlu1 %v1593_v59, %s5705_s5 }
 0xa28   :  { %v1256_v61 = vpop.permute.xlu1 %1255 }
 0xa29   :  { %v5987_v62 = vadd.f32 %v1256_v61, %v1248_v60 }
 0xa2b   :  { %5543 = vtanh.f32 %v5987_v62 }
 0xa30   :  { %v1426_v2 = vpop.permute.xlu0 %1425 }
 0xa31   :  { %v5991_v3 = vadd.f32 %v1426_v2, %v1418_v63 }
 0xa33   :  { %5545 = vtanh.f32 %v5991_v3  ;;  %v1750_v20 = vpop.f32.mrb[18].mxu1 }
 0xa34   :  { %v4854_v22 = vpop.f32.mrb[19].mxu1 }
 0xa35   :  { %v5544_v4 = vpop.eup %5543 }
 0xa36   :  { %1261 = vrot.lane.b32.xlu0 %v5544_v4, %s5704_s30 }
 0xa38   :  { %v1596_v8 = vpop.permute.xlu1 %1595 }
 0xa39   :  { %v5996_v10 = vadd.f32 %v1596_v8, %v1588_v7 }
 0xa3b   :  { %5547 = vtanh.f32 %v5996_v10 }
 0xa3d   :  { %v5546_v47 = vpop.eup %5545 }
 0xa3e   :  { %1431 = vrot.lane.b32.xlu1 %v5546_v47, %s5704_s30 }
 0xa45   :  { %v5548_v53 = vpop.eup %5547 }
 0xa46   :  { %1601 = vrot.lane.b32.xlu0 %v5548_v53, %s5704_s30 }
 0xaa8   :  { %v1262_v11 = vpop.permute.xlu0 %1261 }
 0xaa9   :  { %v1264_v14 = vmul.f32 %v5538_v48, %v1262_v11 }
 0xaab   :  { %1607 = vrot.lane.b32.xlu1 %v1264_v14, %s5705_s5 }
 0xab0   :  { %v1432_v15 = vpop.permute.xlu1 %1431 }
 0xab1   :  { %v1434_v16 = vmul.f32 %v5540_v24, %v1432_v15 }
 0xab3   :  { %1780 = vrot.lane.b32.xlu0 %v1434_v16, %s5705_s5 }
 0xab8   :  { %v1602_v18 = vpop.permute.xlu0 %1601 }
 0xab9   :  { %v1604_v19 = vmul.f32 %v5542_v56, %v1602_v18 }
 0xabb   :  { %1950 = vrot.lane.b32.xlu1 %v1604_v19, %s5705_s5 }
 0xb1d   :  { %v1608_v23 = vpop.permute.xlu1 %1607 }
 0xb1e   :  { %4842 = vmatmul.mubr.msk.f32.vlgmr.msra.gmra.mrb[18].mxu0 %vm40_vm1, %v1608_v23  ;;  %4875 = vmatmul.mubr.msk.f32.vlgmr.msra.gmra.mrb[20].mxu1 %vm40_vm1, %v1608_v23 }
 0xb1f   :  { %5296 = vmatpush3.bf16.msra.mxu0 %v5807_v46  ;;  %5314 = vmatpush3.bf16.msra.mxu1 %v5861_v37 }
 0xb20   :  { %5297 = vmatprep.subr.bf16.mxu0 %v5701_v0  ;;  %5315 = vmatprep.subr.bf16.mxu1 %v5701_v0 }
 0xb21   :  { %4863 = vmatprep.mubr.msk.f32.mxu0 %vm5702_vm0, %v5703_v1  ;;  %4896 = vmatprep.mubr.msk.f32.mxu1 %vm5702_vm0, %v5703_v1 }
 0xb23   :  { %5299 = vmatpush3.bf16.msra.mxu0 %v5812_v50  ;;  %5317 = vmatpush3.bf16.msra.mxu1 %v5867_v42 }
 0xb24   :  { %5306 = vmatprep.subr.bf16.mxu0 %v5701_v0  ;;  %5324 = vmatprep.subr.bf16.mxu1 %v5701_v0 }
 0xb25   :  { %v1781_v25 = vpop.permute.xlu0 %1780 }
 0xb26   :  { %4864 = vmatmul.mubr.msk.f32.vlgmr.msra.gmra.mrb[20].mxu0 %vm40_vm1, %v1781_v25  ;;  %4897 = vmatmul.mubr.msk.f32.vlgmr.msra.gmra.mrb[22].mxu1 %vm40_vm1, %v1781_v25 }
 0xb27   :  { %5308 = vmatpush3.bf16.msra.mxu0 %v5877_v45  ;;  %4885 = vmatprep.mubr.msk.f32.mxu0 %vm5702_vm0, %v5703_v1 }
 0xb28   :  { %5309 = vmatprep.subr.bf16.mxu0 %v5701_v0  ;;  %5326 = vmatpush3.bf16.msra.mxu1 %v5752_v9 }
 0xb29   :  { %5327 = vmatprep.subr.bf16.mxu1 %v5701_v0  ;;  %4918 = vmatprep.mubr.msk.f32.mxu1 %vm5702_vm0, %v5703_v1 }
 0xb2b   :  { %5311 = vmatpush3.bf16.msra.mxu0 %v5884_v51 }
 0xb2c   :  { %5329 = vmatpush3.bf16.msra.mxu1 %v5759_v13  ;;  %5318 = vmatprep.subr.bf16.mxu0 %v5701_v0 }
 0xb2d   :  { %v1951_v26 = vpop.permute.xlu1 %1950  ;;  %5336 = vmatprep.subr.bf16.mxu1 %v5701_v0 }
 0xb2e   :  { %4886 = vmatmul.mubr.msk.f32.vlgmr.msra.gmra.mrb[22].mxu0 %vm40_vm1, %v1951_v26 }
 0xb2f   :  { %5320 = vmatpush3.bf16.msra.mxu0 %v5750_v5  ;;  %4907 = vmatprep.mubr.msk.f32.mxu0 %vm5702_vm0, %v5703_v1 }
 0xb30   :  { %5321 = vmatprep.subr.bf16.mxu0 %v5701_v0 }
 0xb33   :  { %5323 = vmatpush3.bf16.msra.mxu0 %v5755_v12 }
 0xb34   :  { %5330 = vmatprep.subr.bf16.mxu0 %v5701_v0 }
 0xbf1   :  { %v1677_v27 = vpop.f32.mrb[18].mxu0  ;;  %v1920_v28 = vpop.f32.mrb[20].mxu1 }
 0xbf2   :  { %v1751_v29 = vadd.f32 %v1750_v20, %v1677_v27  ;;  %v4843_v30 = vpop.f32.mrb[19].mxu0  ;;  %v4876_v31 = vpop.f32.mrb[21].mxu1 }
 0xbf4   :  { %v1754_v32 = vadd.f32 %v5783_v17, %v1751_v29 }
 0xbf6   :  { %5549 = vtanh.f32 %v1754_v32  ;;  %v4343_v54 = vmul.f32 -1.442695, %v1754_v32 }
 0xbf9   :  { %v1850_v33 = vpop.f32.mrb[20].mxu0  ;;  %v2090_v34 = vpop.f32.mrb[22].mxu1 }
 0xbfa   :  { %v1921_v36 = vadd.f32 %v1920_v28, %v1850_v33  ;;  %v4865_v39 = vpop.f32.mrb[21].mxu0  ;;  %v4898_v40 = vpop.f32.mrb[23].mxu1 }
 0xbfc   :  { %v1924_v43 = vadd.f32 %v5833_v58, %v1921_v36 }
 0xbfe   :  { %5551 = vtanh.f32 %v1924_v43  ;;  %v4346_v55 = vmul.f32 -1.442695, %v1924_v43 }
 0xc00   :  { %v5550_v44 = vpop.eup %5549 }
 0xc01   :  { %v2020_v48 = vpop.f32.mrb[22].mxu0  ;;  %1764 = vrot.lane.b32.xlu0 %v5550_v44, %s5704_s30 }
 0xc02   :  { %v2091_v49 = vadd.f32 %v2090_v34, %v2020_v48  ;;  %v4887_v52 = vpop.f32.mrb[23].mxu0 }
 0xc04   :  { %v2094_v21 = vadd.f32 %v5906_v6, %v2091_v49 }
 0xc06   :  { %5553 = vtanh.f32 %v2094_v21  ;;  %v4349_v57 = vmul.f32 -1.442695, %v2094_v21 }
 0xc07   :  { %5555 = vpow2.f32 %v4343_v54 }
 0xc08   :  { %v5552_v24 = vpop.eup %5551  ;;  %5557 = vpow2.f32 %v4346_v55 }
 0xc09   :  { %1934 = vrot.lane.b32.xlu1 %v5552_v24, %s5704_s30  ;;  %5559 = vpow2.f32 %v4349_v57 }
 0xc10   :  { %v5554_v17 = vpop.eup %5553 }
 0xc11   :  { %2104 = vrot.lane.b32.xlu0 %v5554_v17, %s5704_s30  ;;  %v5556_v56 = vpop.eup %5555  ;;  %v6121_v17 = vld [vmem:[#allocation2 + $0x40] ss:$0 sm:$0xff] }
 0xc12   :  { %v1758_v59 = vadd.f32 1.0, %v5556_v56  ;;  %v5558_v60 = vpop.eup %5557 }
 0xc13   :  { %v1928_v61 = vadd.f32 1.0, %v5558_v60  ;;  %v5560_v63 = vpop.eup %5559 }
 0xc14   :  { %5561 = vrcp.f32 %v1758_v59  ;;  %v2098_v8 = vadd.f32 1.0, %v5560_v63 }
 0xc15   :  { %5563 = vrcp.f32 %v1928_v61 }
 0xc16   :  { %5565 = vrcp.f32 %v2098_v8 }
 0xc1e   :  { %v5562_v2 = vpop.eup %5561 }
 0xc1f   :  { %v5564_v41 = vpop.eup %5563  ;;  %v1762_v16 = vmul.f32 %v5562_v2, %v5987_v62  ;;  %v2119_v62 = vld [vmem:[%s6373_s0 + $0x28] sm:$0xff] }
 0xc20   :  { %v5566_v11 = vpop.eup %5565  ;;  %v1932_v20 = vmul.f32 %v5564_v41, %v5991_v3  ;;  %4919 = vmatmul.mubr.msk.f32.vlgmr.msra.gmra.mrb[24].mxu1 %vm40_vm1, %v2119_v62 }
 0xc21   :  { %v2102_v26 = vmul.f32 %v5566_v11, %v5996_v10  ;;  %5338 = vmatpush3.bf16.msra.mxu1 %v5795_v35  ;;  %4940 = vmatprep.mubr.msk.f32.mxu1 %vm5702_vm0, %v5703_v1 }
 0xc22   :  { %5339 = vmatprep.subr.bf16.mxu1 %v5701_v0 }
 0xc25   :  { %5341 = vmatpush3.bf16.msra.mxu1 %v5800_v38 }
 0xc26   :  { %5348 = vmatprep.subr.bf16.mxu1 %v5701_v0 }
 0xc73   :  { %v1765_v4 = vpop.permute.xlu0 %1764 }
 0xc74   :  { %v1767_v7 = vmul.f32 %v5562_v2, %v1765_v4 }
 0xc76   :  { %1769 = vrot.lane.b32.xlu1 %v1767_v7, %s5705_s5 }
 0xc7b   :  { %v1935_v47 = vpop.permute.xlu1 %1934 }
 0xc7c   :  { %v1937_v53 = vmul.f32 %v5564_v41, %v1935_v47 }
 0xc7e   :  { %1939 = vrot.lane.b32.xlu0 %v1937_v53, %s5705_s5 }
 0xc83   :  { %v2105_v14 = vpop.permute.xlu0 %2104 }
 0xc84   :  { %v2107_v15 = vmul.f32 %v5566_v11, %v2105_v14 }
 0xc86   :  { %2109 = vrot.lane.b32.xlu1 %v2107_v15, %s5705_s5 }
 0xce8   :  { %v1770_v18 = vpop.permute.xlu1 %1769 }
 0xce9   :  { %v6059_v19 = vadd.f32 %v1770_v18, %v1762_v16 }
 0xceb   :  { %5567 = vtanh.f32 %v6059_v19 }
 0xcf0   :  { %v1940_v22 = vpop.permute.xlu0 %1939 }
 0xcf1   :  { %v6063_v23 = vadd.f32 %v1940_v22, %v1932_v20 }
 0xcf3   :  { %5569 = vtanh.f32 %v6063_v23  ;;  %v2264_v36 = vpop.f32.mrb[24].mxu1 }
 0xcf4   :  { %v4920_v39 = vpop.f32.mrb[25].mxu1 }
 0xcf5   :  { %v5568_v25 = vpop.eup %5567 }
 0xcf6   :  { %1775 = vrot.lane.b32.xlu0 %v5568_v25, %s5704_s30 }
 0xcf8   :  { %v2110_v27 = vpop.permute.xlu1 %2109 }
 0xcf9   :  { %v6068_v28 = vadd.f32 %v2110_v27, %v2102_v26 }
 0xcfb   :  { %5571 = vtanh.f32 %v6068_v28 }
 0xcfd   :  { %v5570_v3 = vpop.eup %5569 }
 0xcfe   :  { %1945 = vrot.lane.b32.xlu1 %v5570_v3, %s5704_s30 }
 0xd05   :  { %v5572_v10 = vpop.eup %5571 }
 0xd06   :  { %2115 = vrot.lane.b32.xlu0 %v5572_v10, %s5704_s30 }
 0xd68   :  { %v1776_v29 = vpop.permute.xlu0 %1775 }
 0xd69   :  { %v1778_v30 = vmul.f32 %v5562_v2, %v1776_v29 }
 0xd6b   :  { %2121 = vrot.lane.b32.xlu1 %v1778_v30, %s5705_s5 }
 0xd70   :  { %v1946_v31 = vpop.permute.xlu1 %1945 }
 0xd71   :  { %v1948_v32 = vmul.f32 %v5564_v41, %v1946_v31 }
 0xd73   :  { %2294 = vrot.lane.b32.xlu0 %v1948_v32, %s5705_s5 }
 0xd78   :  { %v2116_v33 = vpop.permute.xlu0 %2115 }
 0xd79   :  { %v2118_v34 = vmul.f32 %v5566_v11, %v2116_v33 }
 0xd7b   :  { %2464 = vrot.lane.b32.xlu1 %v2118_v34, %s5705_s5 }
 0xddd   :  { %v2122_v40 = vpop.permute.xlu1 %2121 }
 0xdde   :  { %4908 = vmatmul.mubr.msk.f32.vlgmr.msra.gmra.mrb[24].mxu0 %vm40_vm1, %v2122_v40  ;;  %4941 = vmatmul.mubr.msk.f32.vlgmr.msra.gmra.mrb[26].mxu1 %vm40_vm1, %v2122_v40 }
 0xddf   :  { %5332 = vmatpush3.bf16.msra.mxu0 %v5807_v46  ;;  %5350 = vmatpush3.bf16.msra.mxu1 %v5861_v37 }
 0xde0   :  { %5333 = vmatprep.subr.bf16.mxu0 %v5701_v0  ;;  %5351 = vmatprep.subr.bf16.mxu1 %v5701_v0 }
 0xde1   :  { %4929 = vmatprep.mubr.msk.f32.mxu0 %vm5702_vm0, %v5703_v1  ;;  %4962 = vmatprep.mubr.msk.f32.mxu1 %vm5702_vm0, %v5703_v1 }
 0xde3   :  { %5335 = vmatpush3.bf16.msra.mxu0 %v5812_v50  ;;  %5353 = vmatpush3.bf16.msra.mxu1 %v5867_v42 }
 0xde4   :  { %5342 = vmatprep.subr.bf16.mxu0 %v5701_v0  ;;  %5360 = vmatprep.subr.bf16.mxu1 %v5701_v0 }
 0xde5   :  { %v2295_v43 = vpop.permute.xlu0 %2294 }
 0xde6   :  { %4930 = vmatmul.mubr.msk.f32.vlgmr.msra.gmra.mrb[26].mxu0 %vm40_vm1, %v2295_v43  ;;  %4963 = vmatmul.mubr.msk.f32.vlgmr.msra.gmra.mrb[28].mxu1 %vm40_vm1, %v2295_v43 }
 0xde7   :  { %5344 = vmatpush3.bf16.msra.mxu0 %v5877_v45  ;;  %4951 = vmatprep.mubr.msk.f32.mxu0 %vm5702_vm0, %v5703_v1 }
 0xde8   :  { %5345 = vmatprep.subr.bf16.mxu0 %v5701_v0  ;;  %5362 = vmatpush3.bf16.msra.mxu1 %v5752_v9 }
 0xde9   :  { %5363 = vmatprep.subr.bf16.mxu1 %v5701_v0  ;;  %4984 = vmatprep.mubr.msk.f32.mxu1 %vm5702_vm0, %v5703_v1 }
 0xdeb   :  { %5347 = vmatpush3.bf16.msra.mxu0 %v5884_v51 }
 0xdec   :  { %5365 = vmatpush3.bf16.msra.mxu1 %v5759_v13  ;;  %5354 = vmatprep.subr.bf16.mxu0 %v5701_v0 }
 0xded   :  { %v2465_v44 = vpop.permute.xlu1 %2464  ;;  %5372 = vmatprep.subr.bf16.mxu1 %v5701_v0 }
 0xdee   :  { %4952 = vmatmul.mubr.msk.f32.vlgmr.msra.gmra.mrb[28].mxu0 %vm40_vm1, %v2465_v44 }
 0xdef   :  { %5356 = vmatpush3.bf16.msra.mxu0 %v5750_v5  ;;  %4973 = vmatprep.mubr.msk.f32.mxu0 %vm5702_vm0, %v5703_v1 }
 0xdf0   :  { %5357 = vmatprep.subr.bf16.mxu0 %v5701_v0 }
 0xdf3   :  { %5359 = vmatpush3.bf16.msra.mxu0 %v5755_v12 }
 0xdf4   :  { %5366 = vmatprep.subr.bf16.mxu0 %v5701_v0 }
 0xeb1   :  { %v2191_v48 = vpop.f32.mrb[24].mxu0  ;;  %v2434_v49 = vpop.f32.mrb[26].mxu1 }
 0xeb2   :  { %v2265_v52 = vadd.f32 %v2264_v36, %v2191_v48  ;;  %v4909_v21 = vpop.f32.mrb[25].mxu0  ;;  %v4942_v24 = vpop.f32.mrb[27].mxu1 }
 0xeb4   :  { %v2268_v54 = vadd.f32 %v6121_v17, %v2265_v52 }
 0xeb6   :  { %5573 = vtanh.f32 %v2268_v54  ;;  %v4352_v53 = vmul.f32 -1.442695, %v2268_v54 }
 0xeb9   :  { %v2364_v55 = vpop.f32.mrb[26].mxu0  ;;  %v2604_v56 = vpop.f32.mrb[28].mxu1 }
 0xeba   :  { %v2435_v57 = vadd.f32 %v2434_v49, %v2364_v55  ;;  %v4931_v59 = vpop.f32.mrb[27].mxu0  ;;  %v4964_v60 = vpop.f32.mrb[29].mxu1 }
 0xebc   :  { %v2438_v61 = vadd.f32 %v5833_v58, %v2435_v57 }
 0xebe   :  { %5575 = vtanh.f32 %v2438_v61  ;;  %v4355_v11 = vmul.f32 -1.442695, %v2438_v61 }
 0xec0   :  { %v5574_v63 = vpop.eup %5573 }
 0xec1   :  { %v2534_v2 = vpop.f32.mrb[28].mxu0  ;;  %2278 = vrot.lane.b32.xlu0 %v5574_v63, %s5704_s30 }
 0xec2   :  { %v2605_v4 = vadd.f32 %v2604_v56, %v2534_v2  ;;  %v4953_v7 = vpop.f32.mrb[29].mxu0 }
 0xec4   :  { %v2608_v8 = vadd.f32 %v5906_v6, %v2605_v4 }
 0xec6   :  { %5577 = vtanh.f32 %v2608_v8  ;;  %v4358_v14 = vmul.f32 -1.442695, %v2608_v8 }
 0xec7   :  { %5579 = vpow2.f32 %v4352_v53 }
 0xec8   :  { %v5576_v41 = vpop.eup %5575  ;;  %5581 = vpow2.f32 %v4355_v11 }
 0xec9   :  { %2448 = vrot.lane.b32.xlu1 %v5576_v41, %s5704_s30  ;;  %5583 = vpow2.f32 %v4358_v14 }
 0xed0   :  { %v5578_v47 = vpop.eup %5577 }
 0xed1   :  { %2618 = vrot.lane.b32.xlu0 %v5578_v47, %s5704_s30  ;;  %v5580_v58 = vpop.eup %5579 }
 0xed2   :  { %v2272_v15 = vadd.f32 1.0, %v5580_v58  ;;  %v5582_v16 = vpop.eup %5581  ;;  %v6196_v58 = vld [vmem:[#allocation2 + $0x88] ss:$0 sm:$0xff] }
 0xed3   :  { %v2442_v18 = vadd.f32 1.0, %v5582_v16  ;;  %v5584_v20 = vpop.eup %5583 }
 0xed4   :  { %5585 = vrcp.f32 %v2272_v15  ;;  %v2612_v27 = vadd.f32 1.0, %v5584_v20 }
 0xed5   :  { %5587 = vrcp.f32 %v2442_v18 }
 0xed6   :  { %5589 = vrcp.f32 %v2612_v27 }
 0xede   :  { %v5586_v22 = vpop.eup %5585 }
 0xedf   :  { %v5588_v62 = vpop.eup %5587  ;;  %v2276_v32 = vmul.f32 %v5586_v22, %v6059_v19  ;;  %v2633_v19 = vld [vmem:[%s6373_s0 + $0x30] sm:$0xff] }
 0xee0   :  { %v5590_v29 = vpop.eup %5589  ;;  %v2446_v36 = vmul.f32 %v5588_v62, %v6063_v23  ;;  %4985 = vmatmul.mubr.msk.f32.vlgmr.msra.gmra.mrb[30].mxu1 %vm40_vm1, %v2633_v19 }
 0xee1   :  { %v2616_v44 = vmul.f32 %v5590_v29, %v6068_v28  ;;  %5374 = vmatpush3.bf16.msra.mxu1 %v5795_v35  ;;  %5006 = vmatprep.mubr.msk.f32.mxu1 %vm5702_vm0, %v5703_v1 }
 0xee2   :  { %5375 = vmatprep.subr.bf16.mxu1 %v5701_v0 }
 0xee5   :  { %5377 = vmatpush3.bf16.msra.mxu1 %v5800_v38 }
 0xee6   :  { %5384 = vmatprep.subr.bf16.mxu1 %v5701_v0 }
 0xf33   :  { %v2279_v25 = vpop.permute.xlu0 %2278 }
 0xf34   :  { %v2281_v26 = vmul.f32 %v5586_v22, %v2279_v25 }
 0xf36   :  { %2283 = vrot.lane.b32.xlu1 %v2281_v26, %s5705_s5 }
 0xf3b   :  { %v2449_v3 = vpop.permute.xlu1 %2448 }
 0xf3c   :  { %v2451_v10 = vmul.f32 %v5588_v62, %v2449_v3 }
 0xf3e   :  { %2453 = vrot.lane.b32.xlu0 %v2451_v10, %s5705_s5 }
 0xf43   :  { %v2619_v30 = vpop.permute.xlu0 %2618 }
 0xf44   :  { %v2621_v31 = vmul.f32 %v5590_v29, %v2619_v30 }
 0xf46   :  { %2623 = vrot.lane.b32.xlu1 %v2621_v31, %s5705_s5 }
 0xfa8   :  { %v2284_v33 = vpop.permute.xlu1 %2283 }
 0xfa9   :  { %v6133_v34 = vadd.f32 %v2284_v33, %v2276_v32 }
 0xfab   :  { %5591 = vtanh.f32 %v6133_v34 }
 0xfb0   :  { %v2454_v39 = vpop.permute.xlu0 %2453 }
 0xfb1   :  { %v6137_v40 = vadd.f32 %v2454_v39, %v2446_v36 }
 0xfb3   :  { %5593 = vtanh.f32 %v6137_v40  ;;  %v2778_v57 = vpop.f32.mrb[30].mxu1 }
 0xfb4   :  { %v4986_v59 = vpop.f32.mrb[31].mxu1 }
 0xfb5   :  { %v5592_v43 = vpop.eup %5591 }
 0xfb6   :  { %2289 = vrot.lane.b32.xlu0 %v5592_v43, %s5704_s30 }
 0xfb8   :  { %v2624_v48 = vpop.permute.xlu1 %2623 }
 0xfb9   :  { %v6142_v49 = vadd.f32 %v2624_v48, %v2616_v44 }
 0xfbb   :  { %5595 = vtanh.f32 %v6142_v49 }
 0xfbd   :  { %v5594_v23 = vpop.eup %5593 }
 0xfbe   :  { %2459 = vrot.lane.b32.xlu1 %v5594_v23, %s5704_s30 }
 0xfc5   :  { %v5596_v28 = vpop.eup %5595 }
 0xfc6   :  { %2629 = vrot.lane.b32.xlu0 %v5596_v28, %s5704_s30 }
0x1028   :  { %v2290_v52 = vpop.permute.xlu0 %2289 }
0x1029   :  { %v2292_v21 = vmul.f32 %v5586_v22, %v2290_v52 }
0x102b   :  { %2635 = vrot.lane.b32.xlu1 %v2292_v21, %s5705_s5 }
0x1030   :  { %v2460_v24 = vpop.permute.xlu1 %2459 }
0x1031   :  { %v2462_v54 = vmul.f32 %v5588_v62, %v2460_v24 }
0x1033   :  { %2808 = vrot.lane.b32.xlu0 %v2462_v54, %s5705_s5 }
0x1038   :  { %v2630_v55 = vpop.permute.xlu0 %2629 }
0x1039   :  { %v2632_v56 = vmul.f32 %v5590_v29, %v2630_v55 }
0x103b   :  { %2978 = vrot.lane.b32.xlu1 %v2632_v56, %s5705_s5 }
0x109d   :  { %v2636_v60 = vpop.permute.xlu1 %2635 }
0x109e   :  { %4974 = vmatmul.mubr.msk.f32.vlgmr.msra.gmra.mrb[30].mxu0 %vm40_vm1, %v2636_v60  ;;  %5007 = vmatmul.mubr.msk.f32.vlgmr.msra.gmra.mrb[32].mxu1 %vm40_vm1, %v2636_v60 }
0x109f   :  { %5368 = vmatpush3.bf16.msra.mxu0 %v5807_v46  ;;  %5386 = vmatpush3.bf16.msra.mxu1 %v5861_v37 }
0x10a0   :  { %5369 = vmatprep.subr.bf16.mxu0 %v5701_v0  ;;  %5387 = vmatprep.subr.bf16.mxu1 %v5701_v0 }
0x10a1   :  { %4995 = vmatprep.mubr.msk.f32.mxu0 %vm5702_vm0, %v5703_v1  ;;  %5028 = vmatprep.mubr.msk.f32.mxu1 %vm5702_vm0, %v5703_v1 }
0x10a3   :  { %5371 = vmatpush3.bf16.msra.mxu0 %v5812_v50  ;;  %5389 = vmatpush3.bf16.msra.mxu1 %v5867_v42 }
0x10a4   :  { %5378 = vmatprep.subr.bf16.mxu0 %v5701_v0  ;;  %5396 = vmatprep.subr.bf16.mxu1 %v5701_v0 }
0x10a5   :  { %v2809_v61 = vpop.permute.xlu0 %2808 }
0x10a6   :  { %4996 = vmatmul.mubr.msk.f32.vlgmr.msra.gmra.mrb[32].mxu0 %vm40_vm1, %v2809_v61  ;;  %5029 = vmatmul.mubr.msk.f32.vlgmr.msra.gmra.mrb[34].mxu1 %vm40_vm1, %v2809_v61 }
0x10a7   :  { %5380 = vmatpush3.bf16.msra.mxu0 %v5877_v45  ;;  %5017 = vmatprep.mubr.msk.f32.mxu0 %vm5702_vm0, %v5703_v1 }
0x10a8   :  { %5381 = vmatprep.subr.bf16.mxu0 %v5701_v0  ;;  %5398 = vmatpush3.bf16.msra.mxu1 %v5752_v9 }
0x10a9   :  { %5399 = vmatprep.subr.bf16.mxu1 %v5701_v0  ;;  %5050 = vmatprep.mubr.msk.f32.mxu1 %vm5702_vm0, %v5703_v1 }
0x10ab   :  { %5383 = vmatpush3.bf16.msra.mxu0 %v5884_v51 }
0x10ac   :  { %5401 = vmatpush3.bf16.msra.mxu1 %v5759_v13  ;;  %5390 = vmatprep.subr.bf16.mxu0 %v5701_v0 }
0x10ad   :  { %v2979_v63 = vpop.permute.xlu1 %2978  ;;  %5408 = vmatprep.subr.bf16.mxu1 %v5701_v0 }
0x10ae   :  { %5018 = vmatmul.mubr.msk.f32.vlgmr.msra.gmra.mrb[34].mxu0 %vm40_vm1, %v2979_v63 }
0x10af   :  { %5392 = vmatpush3.bf16.msra.mxu0 %v5750_v5  ;;  %5039 = vmatprep.mubr.msk.f32.mxu0 %vm5702_vm0, %v5703_v1 }
0x10b0   :  { %5393 = vmatprep.subr.bf16.mxu0 %v5701_v0 }
0x10b3   :  { %5395 = vmatpush3.bf16.msra.mxu0 %v5755_v12 }
0x10b4   :  { %5402 = vmatprep.subr.bf16.mxu0 %v5701_v0 }
0x1171   :  { %v2705_v9 = vpop.f32.mrb[30].mxu0  ;;  %v2948_v13 = vpop.f32.mrb[32].mxu1 }
0x1172   :  { %v2779_v2 = vadd.f32 %v2778_v57, %v2705_v9  ;;  %v4975_v4 = vpop.f32.mrb[31].mxu0  ;;  %v5008_v7 = vpop.f32.mrb[33].mxu1 }
0x1174   :  { %v2782_v8 = vadd.f32 %v6121_v17, %v2779_v2 }
0x1176   :  { %5597 = vtanh.f32 %v2782_v8  ;;  %v4361_v26 = vmul.f32 -1.442695, %v2782_v8 }
0x1179   :  { %v2878_v41 = vpop.f32.mrb[32].mxu0  ;;  %v3118_v47 = vpop.f32.mrb[34].mxu1 }
0x117a   :  { %v2949_v5 = vadd.f32 %v2948_v13, %v2878_v41  ;;  %v4997_v53 = vpop.f32.mrb[33].mxu0  ;;  %v5030_v11 = vpop.f32.mrb[35].mxu1 }
0x117c   :  { %v2952_v14 = vadd.f32 %v6196_v58, %v2949_v5 }
0x117e   :  { %5599 = vtanh.f32 %v2952_v14  ;;  %v4364_v27 = vmul.f32 -1.442695, %v2952_v14 }
0x1180   :  { %v5598_v12 = vpop.eup %5597 }
0x1181   :  { %v3048_v15 = vpop.f32.mrb[34].mxu0  ;;  %2792 = vrot.lane.b32.xlu0 %v5598_v12, %s5704_s30 }
0x1182   :  { %v3119_v16 = vadd.f32 %v3118_v47, %v3048_v15  ;;  %v5019_v18 = vpop.f32.mrb[35].mxu0 }
0x1184   :  { %v3122_v20 = vadd.f32 %v5906_v6, %v3119_v16 }
0x1186   :  { %5601 = vtanh.f32 %v3122_v20  ;;  %v4367_v3 = vmul.f32 -1.442695, %v3122_v20 }
0x1187   :  { %5603 = vpow2.f32 %v4361_v26 }
0x1188   :  { %v5600_v22 = vpop.eup %5599  ;;  %5605 = vpow2.f32 %v4364_v27 }
0x1189   :  { %2962 = vrot.lane.b32.xlu1 %v5600_v22, %s5704_s30  ;;  %5607 = vpow2.f32 %v4367_v3 }
0x1190   :  { %v5602_v25 = vpop.eup %5601 }
0x1191   :  { %3132 = vrot.lane.b32.xlu0 %v5602_v25, %s5704_s30  ;;  %v5604_v62 = vpop.eup %5603 }
0x1192   :  { %v2786_v10 = vadd.f32 1.0, %v5604_v62  ;;  %v5606_v29 = vpop.eup %5605  ;;  %v6272_v62 = vld [vmem:[#allocation2 + $0xd0] ss:$0 sm:$0xff] }
0x1193   :  { %v2956_v30 = vadd.f32 1.0, %v5606_v29  ;;  %v5608_v6 = vpop.eup %5607 }
0x1194   :  { %5609 = vrcp.f32 %v2786_v10  ;;  %v3126_v36 = vadd.f32 1.0, %v5608_v6 }
0x1195   :  { %5611 = vrcp.f32 %v2956_v30 }
0x1196   :  { %5613 = vrcp.f32 %v3126_v36 }
0x119e   :  { %v5610_v31 = vpop.eup %5609 }
0x119f   :  { %v5612_v39 = vpop.eup %5611  ;;  %v2790_v28 = vmul.f32 %v5610_v31, %v6133_v34  ;;  %v3147_v34 = vld [vmem:[%s6373_s0 + $0x38] sm:$0xff] }
0x11a0   :  { %v5614_v48 = vpop.eup %5613  ;;  %v2960_v24 = vmul.f32 %v5612_v39, %v6137_v40  ;;  %5051 = vmatmul.mubr.msk.f32.vlgmr.msra.gmra.mrb[36].mxu1 %vm40_vm1, %v3147_v34 }
0x11a1   :  { %v3130_v57 = vmul.f32 %v5614_v48, %v6142_v49  ;;  %5410 = vmatpush3.bf16.msra.mxu1 %v5795_v35  ;;  %5072 = vmatprep.mubr.msk.f32.mxu1 %vm5702_vm0, %v5703_v1 }
0x11a2   :  { %5411 = vmatprep.subr.bf16.mxu1 %v5701_v0 }
0x11a5   :  { %5413 = vmatpush3.bf16.msra.mxu1 %v5800_v38 }
0x11a6   :  { %5420 = vmatprep.subr.bf16.mxu1 %v5701_v0 }
0x11f3   :  { %v2793_v32 = vpop.permute.xlu0 %2792 }
0x11f4   :  { %v2795_v33 = vmul.f32 %v5610_v31, %v2793_v32 }
0x11f6   :  { %2797 = vrot.lane.b32.xlu1 %v2795_v33, %s5705_s5 }
0x11fb   :  { %v2963_v43 = vpop.permute.xlu1 %2962 }
0x11fc   :  { %v2965_v44 = vmul.f32 %v5612_v39, %v2963_v43 }
0x11fe   :  { %2967 = vrot.lane.b32.xlu0 %v2965_v44, %s5705_s5 }
0x1203   :  { %v3133_v19 = vpop.permute.xlu0 %3132 }
0x1204   :  { %v3135_v23 = vmul.f32 %v5614_v48, %v3133_v19 }
0x1206   :  { %3137 = vrot.lane.b32.xlu1 %v3135_v23, %s5705_s5 }
0x1268   :  { %v2798_v52 = vpop.permute.xlu1 %2797 }
0x1269   :  { %v6207_v21 = vadd.f32 %v2798_v52, %v2790_v28 }
0x126b   :  { %5615 = vtanh.f32 %v6207_v21 }
0x1270   :  { %v2968_v54 = vpop.permute.xlu0 %2967 }
0x1271   :  { %v6211_v55 = vadd.f32 %v2968_v54, %v2960_v24 }
0x1273   :  { %5617 = vtanh.f32 %v6211_v55  ;;  %v3292_v7 = vpop.f32.mrb[36].mxu1 }
0x1274   :  { %v5052_v8 = vpop.f32.mrb[37].mxu1 }
0x1275   :  { %v5616_v56 = vpop.eup %5615 }
0x1276   :  { %2803 = vrot.lane.b32.xlu0 %v5616_v56, %s5704_s30 }
0x1278   :  { %v3138_v59 = vpop.permute.xlu1 %3137 }
0x1279   :  { %v6216_v60 = vadd.f32 %v3138_v59, %v3130_v57 }
0x127b   :  { %5619 = vtanh.f32 %v6216_v60 }
0x127d   :  { %v5618_v40 = vpop.eup %5617 }
0x127e   :  { %2973 = vrot.lane.b32.xlu1 %v5618_v40, %s5704_s30 }
0x1285   :  { %v5620_v49 = vpop.eup %5619 }
0x1286   :  { %3143 = vrot.lane.b32.xlu0 %v5620_v49, %s5704_s30 }
0x12e8   :  { %v2804_v61 = vpop.permute.xlu0 %2803 }
0x12e9   :  { %v2806_v63 = vmul.f32 %v5610_v31, %v2804_v61 }
0x12eb   :  { %3149 = vrot.lane.b32.xlu1 %v2806_v63, %s5705_s5 }
0x12f0   :  { %v2974_v9 = vpop.permute.xlu1 %2973 }
0x12f1   :  { %v2976_v13 = vmul.f32 %v5612_v39, %v2974_v9 }
0x12f3   :  { %3322 = vrot.lane.b32.xlu0 %v2976_v13, %s5705_s5 }
0x12f8   :  { %v3144_v2 = vpop.permute.xlu0 %3143 }
0x12f9   :  { %v3146_v4 = vmul.f32 %v5614_v48, %v3144_v2 }
0x12fb   :  { %3492 = vrot.lane.b32.xlu1 %v3146_v4, %s5705_s5 }
0x135d   :  { %v3150_v41 = vpop.permute.xlu1 %3149 }
0x135e   :  { %5040 = vmatmul.mubr.msk.f32.vlgmr.msra.gmra.mrb[36].mxu0 %vm40_vm1, %v3150_v41  ;;  %5073 = vmatmul.mubr.msk.f32.vlgmr.msra.gmra.mrb[38].mxu1 %vm40_vm1, %v3150_v41 }
0x135f   :  { %5404 = vmatpush3.bf16.msra.mxu0 %v5807_v46  ;;  %5422 = vmatpush3.bf16.msra.mxu1 %v5861_v37 }
0x1360   :  { %5405 = vmatprep.subr.bf16.mxu0 %v5701_v0  ;;  %5423 = vmatprep.subr.bf16.mxu1 %v5701_v0 }
0x1361   :  { %5061 = vmatprep.mubr.msk.f32.mxu0 %vm5702_vm0, %v5703_v1  ;;  %5094 = vmatprep.mubr.msk.f32.mxu1 %vm5702_vm0, %v5703_v1 }
0x1363   :  { %5407 = vmatpush3.bf16.msra.mxu0 %v5812_v50  ;;  %5425 = vmatpush3.bf16.msra.mxu1 %v5867_v42 }
0x1364   :  { %5414 = vmatprep.subr.bf16.mxu0 %v5701_v0  ;;  %5432 = vmatprep.subr.bf16.mxu1 %v5701_v0 }
0x1365   :  { %v3323_v47 = vpop.permute.xlu0 %3322 }
0x1366   :  { %5062 = vmatmul.mubr.msk.f32.vlgmr.msra.gmra.mrb[38].mxu0 %vm40_vm1, %v3323_v47  ;;  %5095 = vmatmul.mubr.msk.f32.vlgmr.msra.gmra.mrb[40].mxu1 %vm40_vm1, %v3323_v47 }
0x1367   :  { %5416 = vmatpush3.bf16.msra.mxu0 %v5877_v45  ;;  %5083 = vmatprep.mubr.msk.f32.mxu0 %vm5702_vm0, %v5703_v1 }
0x1368   :  { %5417 = vmatprep.subr.bf16.mxu0 %v5701_v0  ;;  %5434 = vmatpush3.bf16.msra.mxu1 %v5795_v35 }
0x1369   :  { %5435 = vmatprep.subr.bf16.mxu1 %v5701_v0  ;;  %5116 = vmatprep.mubr.msk.f32.mxu1 %vm5702_vm0, %v5703_v1 }
0x136b   :  { %5419 = vmatpush3.bf16.msra.mxu0 %v5884_v51 }
0x136c   :  { %5437 = vmatpush3.bf16.msra.mxu1 %v5800_v38  ;;  %5426 = vmatprep.subr.bf16.mxu0 %v5701_v0 }
0x136d   :  { %v3493_v5 = vpop.permute.xlu1 %3492  ;;  %5444 = vmatprep.subr.bf16.mxu1 %v5701_v0 }
0x136e   :  { %5084 = vmatmul.mubr.msk.f32.vlgmr.msra.gmra.mrb[40].mxu0 %vm40_vm1, %v3493_v5 }
0x136f   :  { %5428 = vmatpush3.bf16.msra.mxu0 %v5807_v46  ;;  %5105 = vmatprep.mubr.msk.f32.mxu0 %vm5702_vm0, %v5703_v1 }
0x1370   :  { %5429 = vmatprep.subr.bf16.mxu0 %v5701_v0 }
0x1373   :  { %5431 = vmatpush3.bf16.msra.mxu0 %v5812_v50 }
0x1374   :  { %5438 = vmatprep.subr.bf16.mxu0 %v5701_v0 }
0x1431   :  { %v3219_v35 = vpop.f32.mrb[36].mxu0  ;;  %v3462_v38 = vpop.f32.mrb[38].mxu1 }
0x1432   :  { %v3293_v53 = vadd.f32 %v3292_v7, %v3219_v35  ;;  %v5041_v11 = vpop.f32.mrb[37].mxu0  ;;  %v5074_v14 = vpop.f32.mrb[39].mxu1 }
0x1434   :  { %v3296_v12 = vadd.f32 %v6121_v17, %v3293_v53 }
0x1436   :  { %5621 = vtanh.f32 %v3296_v12  ;;  %v4370_v29 = vmul.f32 -1.442695, %v3296_v12 }
0x1439   :  { %v3392_v15 = vpop.f32.mrb[38].mxu0  ;;  %v3632_v16 = vpop.f32.mrb[40].mxu1 }
0x143a   :  { %v3463_v46 = vadd.f32 %v3462_v38, %v3392_v15  ;;  %v5063_v18 = vpop.f32.mrb[39].mxu0  ;;  %v5096_v20 = vpop.f32.mrb[41].mxu1 }
0x143c   :  { %v3466_v22 = vadd.f32 %v6196_v58, %v3463_v46 }
0x143e   :  { %5623 = vtanh.f32 %v3466_v22  ;;  %v4373_v30 = vmul.f32 -1.442695, %v3466_v22 }
0x1440   :  { %v5622_v25 = vpop.eup %5621 }
0x1441   :  { %v3562_v50 = vpop.f32.mrb[40].mxu0  ;;  %3306 = vrot.lane.b32.xlu0 %v5622_v25, %s5704_s30 }
0x1442   :  { %v3633_v26 = vadd.f32 %v3632_v16, %v3562_v50  ;;  %v5085_v27 = vpop.f32.mrb[41].mxu0 }
0x1444   :  { %v3636_v3 = vadd.f32 %v6272_v62, %v3633_v26 }
0x1446   :  { %5625 = vtanh.f32 %v3636_v3  ;;  %v4376_v31 = vmul.f32 -1.442695, %v3636_v3 }
0x1447   :  { %5627 = vpow2.f32 %v4370_v29 }
0x1448   :  { %v5624_v17 = vpop.eup %5623  ;;  %5629 = vpow2.f32 %v4373_v30 }
0x1449   :  { %3476 = vrot.lane.b32.xlu1 %v5624_v17, %s5704_s30  ;;  %5631 = vpow2.f32 %v4376_v31 }
0x1450   :  { %v5626_v10 = vpop.eup %5625 }
0x1451   :  { %3646 = vrot.lane.b32.xlu0 %v5626_v10, %s5704_s30  ;;  %v5628_v6 = vpop.eup %5627 }
0x1452   :  { %v3300_v32 = vadd.f32 1.0, %v5628_v6  ;;  %v5630_v33 = vpop.eup %5629 }
0x1453   :  { %v3470_v36 = vadd.f32 1.0, %v5630_v33  ;;  %v5632_v39 = vpop.eup %5631 }
0x1454   :  { %5633 = vrcp.f32 %v3300_v32  ;;  %v3640_v19 = vadd.f32 1.0, %v5632_v39 }
0x1455   :  { %5635 = vrcp.f32 %v3470_v36 }
0x1456   :  { %5637 = vrcp.f32 %v3640_v19 }
0x145e   :  { %v5634_v43 = vpop.eup %5633 }
0x145f   :  { %v5636_v23 = vpop.eup %5635  ;;  %v3304_v57 = vmul.f32 %v5634_v43, %v6207_v21 }
0x1460   :  { %v5638_v24 = vpop.eup %5637  ;;  %v3474_v40 = vmul.f32 %v5636_v23, %v6211_v55 }
0x1461   :  { %v3644_v9 = vmul.f32 %v5638_v24, %v6216_v60 }
0x14b3   :  { %v3307_v44 = vpop.permute.xlu0 %3306 }
0x14b4   :  { %v3309_v48 = vmul.f32 %v5634_v43, %v3307_v44 }
0x14b6   :  { %3311 = vrot.lane.b32.xlu1 %v3309_v48, %s5705_s5 }
0x14bb   :  { %v3477_v28 = vpop.permute.xlu1 %3476 }
0x14bc   :  { %v3479_v52 = vmul.f32 %v5636_v23, %v3477_v28 }
0x14be   :  { %3481 = vrot.lane.b32.xlu0 %v3479_v52, %s5705_s5 }
0x14c3   :  { %v3647_v54 = vpop.permute.xlu0 %3646 }
0x14c4   :  { %v3649_v56 = vmul.f32 %v5638_v24, %v3647_v54 }
0x14c6   :  { %3651 = vrot.lane.b32.xlu1 %v3649_v56, %s5705_s5 }
0x1528   :  { %v3312_v59 = vpop.permute.xlu1 %3311 }
0x1529   :  { %v3314_v34 = vadd.f32 %v3312_v59, %v3304_v57 }
0x152b   :  { %5639 = vtanh.f32 %v3314_v34 }
0x1530   :  { %v3482_v49 = vpop.permute.xlu0 %3481 }
0x1531   :  { %v6282_v61 = vadd.f32 %v3482_v49, %v3474_v40 }
0x1533   :  { %5641 = vtanh.f32 %v6282_v61 }
0x1535   :  { %v5640_v63 = vpop.eup %5639 }
0x1536   :  { %3317 = vrot.lane.b32.xlu0 %v5640_v63, %s5704_s30 }
0x1538   :  { %v3652_v13 = vpop.permute.xlu1 %3651 }
0x1539   :  { %v6287_v2 = vadd.f32 %v3652_v13, %v3644_v9 }
0x153b   :  { %5643 = vtanh.f32 %v6287_v2 }
0x153d   :  { %v5642_v21 = vpop.eup %5641 }
0x153e   :  { %3487 = vrot.lane.b32.xlu1 %v5642_v21, %s5704_s30 }
0x1545   :  { %v5644_v4 = vpop.eup %5643 }
0x1546   :  { %3657 = vrot.lane.b32.xlu0 %v5644_v4, %s5704_s30 }
0x15a8   :  { %v3318_v55 = vpop.permute.xlu0 %3317 }
0x15a9   :  { %v3320_v7 = vmul.f32 %v5634_v43, %v3318_v55 }
0x15ab   :  { %3737 = vrot.lane.b32.xlu0 %v3320_v7, %s5705_s5 }
0x15b0   :  { %v3488_v8 = vpop.permute.xlu1 %3487 }
0x15b1   :  { %v3490_v41 = vmul.f32 %v5636_v23, %v3488_v8 }
0x15b3   :  { %3662 = vrot.lane.b32.xlu1 %v3490_v41, %s5705_s5 }
0x15b8   :  { %v3658_v60 = vpop.permute.xlu0 %3657 }
0x15b9   :  { %v3660_v47 = vmul.f32 %v5638_v24, %v3658_v60 }
0x15bb   :  { %3837 = vrot.lane.b32.xlu1 %v3660_v47, %s5705_s5 }
0x161d   :  { %v3738_v5 = vpop.permute.xlu0 %3737 }
0x161e   :  { %5117 = vmatmul.mubr.msk.f32.vlgmr.msra.gmra.mrb[42].mxu1 %vm40_vm1, %v3738_v5 }
0x161f   :  { %5446 = vmatpush3.bf16.msra.mxu1 %v5861_v37  ;;  %5138 = vmatprep.mubr.msk.f32.mxu1 %vm5702_vm0, %v5703_v1 }
0x1620   :  { %5447 = vmatprep.subr.bf16.mxu1 %v5701_v0 }
0x1623   :  { %5449 = vmatpush3.bf16.msra.mxu1 %v5867_v42 }
0x1624   :  { %5456 = vmatprep.subr.bf16.mxu1 %v5701_v0 }
0x1625   :  { %v3663_v35 = vpop.permute.xlu1 %3662 }
0x1626   :  { %5106 = vmatmul.mubr.msk.f32.vlgmr.msra.gmra.mrb[42].mxu0 %vm40_vm1, %v3663_v35  ;;  %5139 = vmatmul.mubr.msk.f32.vlgmr.msra.gmra.mrb[44].mxu1 %vm40_vm1, %v3663_v35  ;;  %v4386_v35 = vld [vmem:[%s6375_s2] ss:$0 sm:$0xff] }
0x1627   :  { %5440 = vmatpush3.bf16.msra.mxu0 %v5877_v45  ;;  %5127 = vmatprep.mubr.msk.f32.mxu0 %vm5702_vm0, %v5703_v1 }
0x1628   :  { %5441 = vmatprep.subr.bf16.mxu0 %v5701_v0  ;;  %5458 = vmatpush3.bf16.msra.mxu1 %v5861_v37 }
0x1629   :  { %5459 = vmatprep.subr.bf16.mxu1 %v5701_v0  ;;  %5160 = vmatprep.mubr.msk.f32.mxu1 %vm5702_vm0, %v5703_v1 }
0x162b   :  { %5443 = vmatpush3.bf16.msra.mxu0 %v5884_v51 }
0x162c   :  { %5461 = vmatpush3.bf16.msra.mxu1 %v5867_v42  ;;  %5450 = vmatprep.subr.bf16.mxu0 %v5701_v0 }
0x162d   :  { %v3838_v38 = vpop.permute.xlu1 %3837 }
0x162e   :  { %5128 = vmatmul.mubr.msk.f32.vlgmr.msra.gmra.mrb[44].mxu0 %vm40_vm1, %v3838_v38 }
0x162f   :  { %5452 = vmatpush3.bf16.msra.mxu0 %v5877_v45  ;;  %5149 = vmatprep.mubr.msk.f32.mxu0 %vm5702_vm0, %v5703_v1 }
0x1630   :  { %5453 = vmatprep.subr.bf16.mxu0 %v5701_v0 }
0x1633   :  { %5455 = vmatpush3.bf16.msra.mxu0 %v5884_v51 }
0x1634   :  { %5462 = vmatprep.subr.bf16.mxu0 %v5701_v0 }
0x16f1   :  { %v3807_v37 = vpop.f32.mrb[42].mxu1 }
0x16f2   :  { %v5118_v53 = vpop.f32.mrb[43].mxu1 }
0x16f9   :  { %v3732_v11 = vpop.f32.mrb[42].mxu0  ;;  %v3977_v42 = vpop.f32.mrb[44].mxu1 }
0x16fa   :  { %v3808_v14 = vadd.f32 %v3807_v37, %v3732_v11  ;;  %v5107_v12 = vpop.f32.mrb[43].mxu0  ;;  %v5140_v15 = vpop.f32.mrb[45].mxu1 }
0x16fb   :  { %v4387_v12 = vld [vmem:[%s6375_s2 + $0x1] ss:$0 sm:$0xff] }
0x16fc   :  { %v3811_v16 = vadd.f32 %v6196_v58, %v3808_v14  ;;  %v4223_v15 = vld [vmem:[%s6376_s3] sm:$0xff] }
0x16fe   :  { %5645 = vtanh.f32 %v3811_v16  ;;  %v4379_v25 = vmul.f32 -1.442695, %v3811_v16  ;;  %v4224_v16 = vld [vmem:[%s6376_s3 + $0x8] sm:$0xff] }
0x1701   :  { %v3907_v45 = vpop.f32.mrb[44].mxu0 }
0x1702   :  { %v3978_v46 = vadd.f32 %v3977_v42, %v3907_v45  ;;  %v5129_v18 = vpop.f32.mrb[45].mxu0  ;;  %v4225_v45 = vld [vmem:[%s6376_s3 + $0x10] sm:$0xff] }
0x1703   :  { %v4226_v18 = vld [vmem:[%s6376_s3 + $0x18] sm:$0xff] }
0x1704   :  { %v3981_v20 = vadd.f32 %v6272_v62, %v3978_v46  ;;  %v5463_v46 = vpack.c.bf16 %v4224_v16, %v4223_v15 }
0x1706   :  { %5647 = vtanh.f32 %v3981_v20  ;;  %v4382_v50 = vmul.f32 -1.442695, %v3981_v20  ;;  %v5466_v20 = vpack.c.bf16 %v4226_v18, %v4225_v45 }
0x1707   :  { %5649 = vpow2.f32 %v4379_v25 }
0x1708   :  { %v5646_v22 = vpop.eup %5645  ;;  %5651 = vpow2.f32 %v4382_v50 }
0x1709   :  { %3821 = vrot.lane.b32.xlu0 %v5646_v22, %s5704_s30 }
0x1710   :  { %v5648_v51 = vpop.eup %5647 }
0x1711   :  { %3991 = vrot.lane.b32.xlu1 %v5648_v51, %s5704_s30  ;;  %v5650_v26 = vpop.eup %5649 }
0x1712   :  { %v3815_v27 = vadd.f32 1.0, %v5650_v26  ;;  %v5652_v58 = vpop.eup %5651 }
0x1713   :  { %v3985_v3 = vadd.f32 1.0, %v5652_v58 }
0x1714   :  { %5653 = vrcp.f32 %v3815_v27 }
0x1715   :  { %5655 = vrcp.f32 %v3985_v3 }
0x171e   :  { %v5654_v17 = vpop.eup %5653 }
0x171f   :  { %v5656_v30 = vpop.eup %5655  ;;  %v3819_v32 = vmul.f32 %v5654_v17, %v6282_v61 }
0x1720   :  { %v3989_v39 = vmul.f32 %v5656_v30, %v6287_v2 }
0x177b   :  { %v3822_v10 = vpop.permute.xlu0 %3821 }
0x177c   :  { %v3824_v29 = vmul.f32 %v5654_v17, %v3822_v10 }
0x177e   :  { %3826 = vrot.lane.b32.xlu0 %v3824_v29, %s5705_s5 }
0x1783   :  { %v3992_v6 = vpop.permute.xlu1 %3991 }
0x1784   :  { %v3994_v31 = vmul.f32 %v5656_v30, %v3992_v6 }
0x1786   :  { %3996 = vrot.lane.b32.xlu1 %v3994_v31, %s5705_s5 }
0x17f0   :  { %v3827_v33 = vpop.permute.xlu0 %3826 }
0x17f1   :  { %v3829_v36 = vadd.f32 %v3827_v33, %v3819_v32 }
0x17f3   :  { %5657 = vtanh.f32 %v3829_v36 }
0x17f8   :  { %v3997_v43 = vpop.permute.xlu1 %3996 }
0x17f9   :  { %v3999_v44 = vadd.f32 %v3997_v43, %v3989_v39 }
0x17fb   :  { %5659 = vtanh.f32 %v3999_v44 }
0x17fd   :  { %v5658_v48 = vpop.eup %5657 }
0x17fe   :  { %3832 = vrot.lane.b32.xlu0 %v5658_v48, %s5704_s30 }
0x1805   :  { %v5660_v19 = vpop.eup %5659 }
0x1806   :  { %4002 = vrot.lane.b32.xlu1 %v5660_v19, %s5704_s30 }
0x1870   :  { %v3833_v23 = vpop.permute.xlu0 %3832 }
0x1871   :  { %v3835_v28 = vmul.f32 %v5654_v17, %v3833_v23 }
0x1873   :  { %4082 = vrot.lane.b32.xlu1 %v3835_v28, %s5705_s5 }
0x1878   :  { %v4003_v52 = vpop.permute.xlu1 %4002 }
0x1879   :  { %v4005_v24 = vmul.f32 %v5656_v30, %v4003_v52 }
0x187b   :  { %4007 = vrot.lane.b32.xlu0 %v4005_v24, %s5705_s5 }
0x18e5   :  { %v4083_v54 = vpop.permute.xlu1 %4082 }
0x18e6   :  { %5161 = vmatmul.mubr.msk.f32.vlgmr.msra.gmra.mrb[46].mxu1 %vm40_vm1, %v4083_v54 }
0x18ed   :  { %v4008_v56 = vpop.permute.xlu0 %4007 }
0x18ee   :  { %5150 = vmatmul.mubr.msk.f32.vlgmr.msra.gmra.mrb[46].mxu0 %vm40_vm1, %v4008_v56 }
0x18ef   :  { %5171 = vmatprep.mubr.msk.f32.mxu0 %vm5702_vm0, %v5703_v1  ;;  %5464 = vmatpush3.bf16.msra.mxu0 %v5463_v46 }
0x18f0   :  { %5465 = vmatprep.subr.bf16.mxu0 %v5701_v0  ;;  %v4388_v0 = vld [vmem:[%s6376_s3 + $0x20] ss:$0 sm:$0xff] }
0x18f3   :  { %5467 = vmatpush3.bf16.msra.mxu0 %v5466_v20 }
0x19b9   :  { %v4152_v57 = vpop.f32.mrb[46].mxu1 }
0x19ba   :  { %v5162_v59 = vpop.f32.mrb[47].mxu1 }
0x19c1   :  { %v4077_v34 = vpop.f32.mrb[46].mxu0 }
0x19c2   :  { %v4153_v40 = vadd.f32 %v4152_v57, %v4077_v34  ;;  %v5151_v49 = vpop.f32.mrb[47].mxu0 }
0x19c4   :  { %v4156_v61 = vadd.f32 %v6272_v62, %v4153_v40 }
0x19c6   :  { %5661 = vtanh.f32 %v4156_v61  ;;  %v4385_v9 = vmul.f32 -1.442695, %v4156_v61 }
0x19c8   :  { %5663 = vpow2.f32 %v4385_v9 }
0x19d0   :  { %v5662_v63 = vpop.eup %5661 }
0x19d1   :  { %4166 = vrot.lane.b32.xlu0 %v5662_v63, %s5704_s30 }
0x19d2   :  { %v5664_v13 = vpop.eup %5663 }
0x19d3   :  { %v4160_v2 = vadd.f32 1.0, %v5664_v13 }
0x19d5   :  { %5665 = vrcp.f32 %v4160_v2 }
0x19df   :  { %v5666_v21 = vpop.eup %5665 }
0x19e0   :  { %v4164_v1 = vmul.f32 %v5666_v21, %v3999_v44 }
0x1a43   :  { %v4167_v4 = vpop.permute.xlu0 %4166 }
0x1a44   :  { %v4169_v55 = vmul.f32 %v5666_v21, %v4167_v4 }
0x1a46   :  { %4171 = vrot.lane.b32.xlu1 %v4169_v55, %s5705_s5 }
0x1ab8   :  { %v4172_v7 = vpop.permute.xlu1 %4171 }
0x1ab9   :  { %v4174_v8 = vadd.f32 %v4172_v7, %v4164_v1 }
0x1abb   :  { %5667 = vtanh.f32 %v4174_v8 }
0x1ac5   :  { %v5668_v41 = vpop.eup %5667 }
0x1ac6   :  { %4177 = vrot.lane.b32.xlu0 %v5668_v41, %s5704_s30 }
0x1b38   :  { %v4178_v62 = vpop.permute.xlu0 %4177 }
0x1b39   :  { %v4180_v60 = vmul.f32 %v5666_v21, %v4178_v62 }
0x1b3b   :  { %4182 = vrot.lane.b32.xlu1 %v4180_v60, %s5705_s5 }
0x1bad   :  { %v4183_v47 = vpop.permute.xlu1 %4182 }
0x1bae   :  { %v4185_v5 = vsel %vm40_vm1, %v4183_v47, 0.0 }
0x1baf   :  { %4186 = vadd.xlane.f32.xlu0 %v4185_v5 }
0x1bc5   :  { %4209 = vrot.lane.b32.xlu0 %v4386_v35, %s5706_s21 }
0x1c3c   :  { %v4187_v38 = vpop.xlane.xlu0 %4186 }
0x1c3d   :  { %v4189_v37 = vmul.f32 0.03125, %v4187_v38 }
0x1c3f   :  { %v4190_v53 = vsub.f32 %v4180_v60, %v4189_v37 }
0x1c40   :  { %v4210_v26 = vpop.permute.xlu0 %4209 }
0x1c41   :  { %v4191_v11 = vmul.f32 %v4190_v53, %v4190_v53 }
0x1c43   :  { %4193 = vrot.lane.b32.xlu1 %v4191_v11, %s5705_s5 }
0x1cb5   :  { %v4194_v42 = vpop.permute.xlu1 %4193 }
0x1cb6   :  { %v4196_v14 = vsel %vm40_vm1, %v4194_v42, 0.0 }
0x1cb7   :  { %4197 = vadd.xlane.f32.xlu1 %v4196_v14 }
0x1cc8   :  { %4219 = vrot.lane.b32.xlu1 %v4387_v12, %s5706_s21 }
0x1d44   :  { %v4198_v22 = vpop.xlane.xlu1 %4197 }
0x1d45   :  { %v4199_v51 = vmul.f32 0.03125, %v4198_v22 }
0x1d47   :  { %v4200_v25 = vadd.f32 1e-05, %v4199_v51 }
0x1d48   :  { %v4220_v58 = vpop.permute.xlu1 %4219 }
0x1d49   :  { %5669 = vrsqrt.f32 %v4200_v25 }
0x1d53   :  { %v5670_v50 = vpop.eup %5669 }
0x1d54   :  { %v4202_v27 = vmul.f32 %v5670_v50, %v4190_v53 }
0x1d56   :  { %v4212_v3 = vmul.f32 %v4210_v26, %v4202_v27 }
0x1d58   :  { %v4222_v17 = vadd.f32 %v4220_v58, %v4212_v3 }
0x1d5a   :  { %4233 = vrot.lane.b32.xlu0 %v4222_v17, %s5705_s5 }
0x1dcc   :  { %v4234_v10 = vpop.permute.xlu0 %4233 }
0x1dcd   :  { %5172 = vmatmul.mubr.msk.f32.vlgmr.msra.gmra.mrb[48].mxu0 %vm40_vm1, %v4234_v10 }
0x1ea0   :  { %v4303_v29 = vpop.f32.mrb[48].mxu0 }
0x1ea1   :  { %v4304_v30 = vadd.f32 %v4388_v0, %v4303_v29  ;;  %v5173_v6 = vpop.f32.mrb[49].mxu0 }
0x1ea3   :  { %4308 = vst.msk [vmem:[%s6377_s4] sm:$0xff] %vm4307_vm2, %v4304_v30 }
0x1ea4   :  { %4313 = vsyncpa [#allocation3], 1 }

</bundles_post_ra>
